<compile_context>
chip_gen: v7x
topology: tpu7x:2x2x1
jax: 0.10.0
libtpu: 0.0.40
codegen_flags: <defaults>
</compile_context>

<pallas_src>
import functools
import math

import jax
import jax.numpy as jnp
from jax.experimental import pallas as pl
from jax.experimental.pallas import tpu as pltpu

N_ROWS = 512
IN_DIM = 256
HID_DIM = 128
OUT_DIM = 128
NUM_LAYERS = 3          # module asserts num_layers >= 2
BN_EPS = 1e-5           # nn.BatchNorm1d default


# --------------------------------------------------------------------------- kernel
def _make_mlp_kernel(num_layers):
    """Kernel over one row tile: refs = (x, W0, b0, ..., W_{L-1}, b_{L-1}, out)."""

    def kernel(*refs):
        x_ref = refs[0]
        out_ref = refs[-1]
        wb = refs[1:-1]

        h = x_ref[...]                                            # bf16 [TN, in_dim]
        for k in range(num_layers):                               # static unroll
            w = wb[2 * k][...]                                    # bf16 [d_in, d_out]
            b = wb[2 * k + 1][...]                                # f32  [1, d_out]
            acc = jnp.dot(h, w, preferred_element_type=jnp.float32) + b   # f32 accumulate
            if k < num_layers - 1:
                acc = jnp.maximum(acc, 0.0)                       # ReLU (BN folded into W_{k+1})
                h = acc.astype(jnp.bfloat16)                      # bf16 operand for next MXU pass
            else:
                h = acc                                           # final logits stay f32

        # log_softmax over the last (lane) axis, all in f32, write result directly.
        m = jnp.max(h, axis=-1, keepdims=True)
        z = h - m
        lse = jnp.log(jnp.sum(jnp.exp(z), axis=-1, keepdims=True))
        out_ref[...] = z - lse

    return kernel


# --------------------------------------------------------------------------- host-side BN fold
def _fold_bn_into_next_linear(params):
    """Fold eval-mode BatchNorm (after ReLU of layer k) into Linear k+1 (done once)."""
    Ws, bs = params["W"], params["b"]
    L = len(Ws)
    Wf = [Ws[0]]
    bf = [bs[0].reshape(1, -1)]
    for k in range(1, L):
        g = params["bn_gamma"][k - 1]
        be = params["bn_beta"][k - 1]
        mu = params["bn_mean"][k - 1]
        var = params["bn_var"][k - 1]
        scale = g / jnp.sqrt(var + BN_EPS)                        # [d_hid]
        shift = be - mu * scale                                   # [d_hid]
        Wf.append(scale[:, None] * Ws[k])                         # fold scale into weight
        bf.append((shift @ Ws[k] + bs[k]).reshape(1, -1))         # fold shift into bias
    return Wf, bf


# --------------------------------------------------------------------------- grid sizing
def _num_row_tiles(n_rows):
    """2 grid steps only when the chip has two TensorCores (v7x); else 1 step."""
    try:
        kind = jax.devices()[0].device_kind.lower()
    except Exception:
        return 1
    tiles = 2 if "v7" in kind else 1
    if n_rows % tiles != 0 or (n_rows // tiles) % 8 != 0:
        return 1
    return tiles


# --------------------------------------------------------------------------- cached pallas_call
@functools.lru_cache(maxsize=None)
def _build_pallas_call(n_rows, tile_n, dims):
    """dims = (in_dim, hid_dim, ..., out_dim); built once per unique shape config."""
    num_layers = len(dims) - 1

    in_specs = [pl.BlockSpec((tile_n, dims[0]), lambda i: (i, 0))]        # bf16 x tile
    for k in range(num_layers):
        in_specs.append(pl.BlockSpec((dims[k], dims[k + 1]), lambda i: (0, 0)))  # resident W
        in_specs.append(pl.BlockSpec((1, dims[k + 1]), lambda i: (0, 0)))        # resident b

    return pl.pallas_call(
        _make_mlp_kernel(num_layers),
        out_shape=jax.ShapeDtypeStruct((n_rows, dims[-1]), jnp.float32),
        grid=(n_rows // tile_n,),
        in_specs=in_specs,
        out_specs=pl.BlockSpec((tile_n, dims[-1]), lambda i: (i, 0)),
        compiler_params=pltpu.CompilerParams(
            dimension_semantics=("parallel",)),
    )


# --------------------------------------------------------------------------- forward builder
def make_mlp_forward(params, *, n_rows, tile_n=None):
    """Fold BN once, build the pallas_call once, return a jitted forward(x)."""
    Wf, bf = _fold_bn_into_next_linear(params)
    Wf = [w.astype(jnp.bfloat16) for w in Wf]                     # bf16 MXU operands
    bf = [b.astype(jnp.float32) for b in bf]                      # f32 bias add
    dims = (Wf[0].shape[0],) + tuple(w.shape[1] for w in Wf)

    if tile_n is None:
        tile_n = n_rows // _num_row_tiles(n_rows)
    assert n_rows % tile_n == 0

    call = _build_pallas_call(n_rows, int(tile_n), dims)

    flat_wb = []
    for w, b in zip(Wf, bf):
        flat_wb += [w, b]

    @jax.jit
    def forward(x):
        return call(x.astype(jnp.bfloat16), *flat_wb)

    return forward


# --------------------------------------------------------------------------- pure-JAX reference
def mlp_ref(x, params):
    """Mirrors the PyTorch forward in eval mode (un-folded BN, dropout=identity), f32."""
    L = len(params["W"])
    h = x
    for k in range(L - 1):
        h = h @ params["W"][k] + params["b"][k]
        h = jnp.maximum(h, 0.0)
        scale = params["bn_gamma"][k] / jnp.sqrt(params["bn_var"][k] + BN_EPS)
        h = (h - params["bn_mean"][k]) * scale + params["bn_beta"][k]
        # F.dropout(..., training=False) -> identity
    h = h @ params["W"][L - 1] + params["b"][L - 1]
    return jax.nn.log_softmax(h, axis=-1)


# --------------------------------------------------------------------------- params
def init_params(key, in_dim=IN_DIM, hid_dim=HID_DIM, out_dim=OUT_DIM,
                num_layers=NUM_LAYERS):
    dims = [in_dim] + [hid_dim] * (num_layers - 1) + [out_dim]
    keys = jax.random.split(key, 2 * num_layers)
    Ws, bs = [], []
    for k in range(num_layers):
        fan_in, fan_out = dims[k], dims[k + 1]
        bound = 1.0 / math.sqrt(fan_in)                           # nn.Linear.reset_parameters
        Ws.append(jax.random.uniform(keys[2 * k], (fan_in, fan_out),
                                     jnp.float32, -bound, bound))
        bs.append(jax.random.uniform(keys[2 * k + 1], (fan_out,),
                                     jnp.float32, -bound, bound))
    nbn = num_layers - 1
    return dict(
        W=Ws, b=bs,
        bn_gamma=[jnp.ones((hid_dim,), jnp.float32)] * nbn,       # BatchNorm1d.reset_parameters
        bn_beta=[jnp.zeros((hid_dim,), jnp.float32)] * nbn,
        bn_mean=[jnp.zeros((hid_dim,), jnp.float32)] * nbn,
        bn_var=[jnp.ones((hid_dim,), jnp.float32)] * nbn,
    )


# --------------------------------------------------------------------------- main
if __name__ == "__main__":
    key = jax.random.PRNGKey(0)
    kx, kp = jax.random.split(key)

    x = jax.random.normal(kx, (N_ROWS, IN_DIM), jnp.float32)
    params = init_params(kp)

    forward = make_mlp_forward(params, n_rows=N_ROWS)             # fold + build + jit ONCE
    out = jax.block_until_ready(forward(x))
    _ = jax.block_until_ready(forward(x))                         # cached path, no retrace

    ref = mlp_ref(x, params)                                      # f32 eval-mode reference

    assert out.shape == (N_ROWS, OUT_DIM)
    # bf16 MXU operands with f32 accumulation -> loosened tolerance vs. full-f32 reference.
    assert jnp.allclose(out, ref, atol=1e-1, rtol=0.0), "mismatch vs JAX reference"
    assert float(jnp.mean(jnp.abs(out - ref))) < 2e-2, "mean error too large vs JAX reference"
    print("KERNEL_OK")
</pallas_src>

<mosaic_0001>
module attributes {stable_mosaic.version = 11 : i64} {
  func.func @kernel(%arg0: i32, %arg1: memref<512x256xbf16, #tpu.memory_space<vmem>>, %arg2: memref<256x128xbf16, #tpu.memory_space<vmem>>, %arg3: memref<1x128xf32, #tpu.memory_space<vmem>>, %arg4: memref<128x128xbf16, #tpu.memory_space<vmem>>, %arg5: memref<1x128xf32, #tpu.memory_space<vmem>>, %arg6: memref<128x128xbf16, #tpu.memory_space<vmem>>, %arg7: memref<1x128xf32, #tpu.memory_space<vmem>>, %arg8: memref<512x128xf32, #tpu.memory_space<vmem>>) attributes {dimension_semantics = [#tpu.dimension_semantics<parallel>], iteration_bounds = array<i64: 1>, scalar_prefetch = 0 : i64, scratch_operands = 0 : i64, tpu.core_type = #tpu.core_type<tc>, window_params = [{transform_indices = @transform_0, window_bounds = array<i64: 512, 256>}, {pipeline_mode = #tpu.pipeline_mode<synchronous>, transform_indices = @transform_1, window_bounds = array<i64: 256, 128>}, {pipeline_mode = #tpu.pipeline_mode<synchronous>, transform_indices = @transform_2, window_bounds = array<i64: 1, 128>}, {pipeline_mode = #tpu.pipeline_mode<synchronous>, transform_indices = @transform_3, window_bounds = array<i64: 128, 128>}, {pipeline_mode = #tpu.pipeline_mode<synchronous>, transform_indices = @transform_4, window_bounds = array<i64: 1, 128>}, {pipeline_mode = #tpu.pipeline_mode<synchronous>, transform_indices = @transform_5, window_bounds = array<i64: 128, 128>}, {pipeline_mode = #tpu.pipeline_mode<synchronous>, transform_indices = @transform_6, window_bounds = array<i64: 1, 128>}, {transform_indices = @transform_7, window_bounds = array<i64: 512, 128>}]} {
    %c0 = arith.constant 0 : index
    %c0_0 = arith.constant 0 : index
    %0 = vector.load %arg1[%c0, %c0_0] : memref<512x256xbf16, #tpu.memory_space<vmem>>, vector<512x256xbf16>
    %c0_1 = arith.constant 0 : index
    %c0_2 = arith.constant 0 : index
    %1 = vector.load %arg2[%c0_1, %c0_2] : memref<256x128xbf16, #tpu.memory_space<vmem>>, vector<256x128xbf16>
    %c0_3 = arith.constant 0 : index
    %c0_4 = arith.constant 0 : index
    %2 = vector.load %arg3[%c0_3, %c0_4] : memref<1x128xf32, #tpu.memory_space<vmem>>, vector<1x128xf32>
    %cst = arith.constant dense<0.000000e+00> : vector<512x128xf32>
    %3 = tpu.matmul %0, %1, %cst {dimension_numbers = #tpu.dot_dimension_numbers<[1], [0], [0], [1], [0, 0, 1, 1], [], []>} : vector<512x256xbf16>, vector<256x128xbf16>, vector<512x128xf32> -> vector<512x128xf32>
    %4 = vector.broadcast %2 : vector<1x128xf32> to vector<512x128xf32>
    %5 = arith.addf %3, %4 : vector<512x128xf32>
    %cst_5 = arith.constant 0.000000e+00 : f32
    %6 = vector.broadcast %cst_5 : f32 to vector<512x128xf32>
    %7 = arith.maximumf %5, %6 : vector<512x128xf32>
    %8 = arith.truncf %7 : vector<512x128xf32> to vector<512x128xbf16>
    %c0_6 = arith.constant 0 : index
    %c0_7 = arith.constant 0 : index
    %9 = vector.load %arg4[%c0_6, %c0_7] : memref<128x128xbf16, #tpu.memory_space<vmem>>, vector<128x128xbf16>
    %c0_8 = arith.constant 0 : index
    %c0_9 = arith.constant 0 : index
    %10 = vector.load %arg5[%c0_8, %c0_9] : memref<1x128xf32, #tpu.memory_space<vmem>>, vector<1x128xf32>
    %cst_10 = arith.constant dense<0.000000e+00> : vector<512x128xf32>
    %11 = tpu.matmul %8, %9, %cst_10 {dimension_numbers = #tpu.dot_dimension_numbers<[1], [0], [0], [1], [0, 0, 1, 1], [], []>} : vector<512x128xbf16>, vector<128x128xbf16>, vector<512x128xf32> -> vector<512x128xf32>
    %12 = vector.broadcast %10 : vector<1x128xf32> to vector<512x128xf32>
    %13 = arith.addf %11, %12 : vector<512x128xf32>
    %cst_11 = arith.constant 0.000000e+00 : f32
    %14 = vector.broadcast %cst_11 : f32 to vector<512x128xf32>
    %15 = arith.maximumf %13, %14 : vector<512x128xf32>
    %16 = arith.truncf %15 : vector<512x128xf32> to vector<512x128xbf16>
    %c0_12 = arith.constant 0 : index
    %c0_13 = arith.constant 0 : index
    %17 = vector.load %arg6[%c0_12, %c0_13] : memref<128x128xbf16, #tpu.memory_space<vmem>>, vector<128x128xbf16>
    %c0_14 = arith.constant 0 : index
    %c0_15 = arith.constant 0 : index
    %18 = vector.load %arg7[%c0_14, %c0_15] : memref<1x128xf32, #tpu.memory_space<vmem>>, vector<1x128xf32>
    %cst_16 = arith.constant dense<0.000000e+00> : vector<512x128xf32>
    %19 = tpu.matmul %16, %17, %cst_16 {dimension_numbers = #tpu.dot_dimension_numbers<[1], [0], [0], [1], [0, 0, 1, 1], [], []>} : vector<512x128xbf16>, vector<128x128xbf16>, vector<512x128xf32> -> vector<512x128xf32>
    %20 = vector.broadcast %18 : vector<1x128xf32> to vector<512x128xf32>
    %21 = arith.addf %19, %20 : vector<512x128xf32>
    %cst_17 = arith.constant dense<0xFF800000> : vector<512xf32>
    %22 = vector.multi_reduction <maximumf>, %21, %cst_17 [1] : vector<512x128xf32> to vector<512xf32>
    %23 = vector.shape_cast %22 : vector<512xf32> to vector<512x1xf32>
    %24 = vector.broadcast %23 : vector<512x1xf32> to vector<512x128xf32>
    %25 = arith.subf %21, %24 : vector<512x128xf32>
    %26 = math.exp %25 : vector<512x128xf32>
    %cst_18 = arith.constant dense<0.000000e+00> : vector<512xf32>
    %27 = vector.multi_reduction <add>, %26, %cst_18 [1] : vector<512x128xf32> to vector<512xf32>
    %28 = vector.shape_cast %27 : vector<512xf32> to vector<512x1xf32>
    %29 = math.log %28 : vector<512x1xf32>
    %30 = vector.broadcast %29 : vector<512x1xf32> to vector<512x128xf32>
    %31 = arith.subf %25, %30 : vector<512x128xf32>
    %c0_19 = arith.constant 0 : index
    %c0_20 = arith.constant 0 : index
    %32 = vector.load %arg8[%c0_19, %c0_20] : memref<512x128xf32, #tpu.memory_space<vmem>>, vector<512x128xf32>
    tpu.vector_store %arg8[%c0_19, %c0_20], %31 {strides = array<i32>} : memref<512x128xf32, #tpu.memory_space<vmem>>, vector<512x128xf32>,
    return
  }
  func.func @transform_0(%arg0: i32) -> (i32, i32) {
    %c0_i32 = arith.constant 0 : i32
    %c0_i32_0 = arith.constant 0 : i32
    return %arg0, %c0_i32 : i32, i32
  }
  func.func @transform_1(%arg0: i32) -> (i32, i32) {
    %c0_i32 = arith.constant 0 : i32
    %c0_i32_0 = arith.constant 0 : i32
    %c0_i32_1 = arith.constant 0 : i32
    return %c0_i32, %c0_i32_0 : i32, i32
  }
  func.func @transform_2(%arg0: i32) -> (i32, i32) {
    %c0_i32 = arith.constant 0 : i32
    %c0_i32_0 = arith.constant 0 : i32
    %c0_i32_1 = arith.constant 0 : i32
    return %c0_i32, %c0_i32_0 : i32, i32
  }
  func.func @transform_3(%arg0: i32) -> (i32, i32) {
    %c0_i32 = arith.constant 0 : i32
    %c0_i32_0 = arith.constant 0 : i32
    %c0_i32_1 = arith.constant 0 : i32
    return %c0_i32, %c0_i32_0 : i32, i32
  }
  func.func @transform_4(%arg0: i32) -> (i32, i32) {
    %c0_i32 = arith.constant 0 : i32
    %c0_i32_0 = arith.constant 0 : i32
    %c0_i32_1 = arith.constant 0 : i32
    return %c0_i32, %c0_i32_0 : i32, i32
  }
  func.func @transform_5(%arg0: i32) -> (i32, i32) {
    %c0_i32 = arith.constant 0 : i32
    %c0_i32_0 = arith.constant 0 : i32
    %c0_i32_1 = arith.constant 0 : i32
    return %c0_i32, %c0_i32_0 : i32, i32
  }
  func.func @transform_6(%arg0: i32) -> (i32, i32) {
    %c0_i32 = arith.constant 0 : i32
    %c0_i32_0 = arith.constant 0 : i32
    %c0_i32_1 = arith.constant 0 : i32
    return %c0_i32, %c0_i32_0 : i32, i32
  }
  func.func @transform_7(%arg0: i32) -> (i32, i32) {
    %c0_i32 = arith.constant 0 : i32
    %c0_i32_0 = arith.constant 0 : i32
    return %arg0, %c0_i32 : i32, i32
  }
}

</mosaic_0001>

<bundles_post_ra>
// kernel: forward.1
= control target key start
LH: loop header
LB: loop body
LE: loop exit
PB: predicated region body
PF: predicated region fallthrough
CT: control target
= control target key end

     0   :  { %v3219_v1 = vmov 0   ;;  %s4282_s0 = inlined_call_operand.vmem [shape: bf16[512,256], index: 0, kind: input, shape index: {}]   ;;  %s4283_s1 = inlined_call_operand.vmem [shape: bf16[256,128], index: 1, kind: input, shape index: {}]   ;;  %s4284_s2 = inlined_call_operand.vmem [shape: f32[1,128], index: 2, kind: input, shape index: {}]   ;;  %s4285_s3 = inlined_call_operand.vmem [shape: bf16[128,128], index: 3, kind: input, shape index: {}]   ;;  %s4286_s4 = inlined_call_operand.vmem [shape: f32[1,128], index: 4, kind: input, shape index: {}]   ;;  %s4287_s5 = inlined_call_operand.vmem [shape: bf16[128,128], index: 5, kind: input, shape index: {}]   ;;  %s4288_s6 = inlined_call_operand.vmem [shape: f32[1,128], index: 6, kind: input, shape index: {}]   ;;  %s4289_s7 = inlined_call_operand.hbm [shape: f32[512,128], index: 7, kind: output, shape index: {}]  }
   0x1   :  { %v2811_v0 = vld [vmem:[%s4283_s1] sm:$0xff]   ;;  %547 = vmatprep.subr.bf16.mxu0 %v3219_v1  ;;  %v2812_v2 = vld [vmem:[%s4283_s1 + $0x8] sm:$0xff]   ;;  %v2813_v3 = vld [vmem:[%s4283_s1 + $0x10] sm:$0xff]  }
   0x2   :  { %548 = vmatpush1.bf16.msra.mxu0 %v2811_v0  ;;  %v2814_v4 = vld [vmem:[%s4283_s1 + $0x18] sm:$0xff]   ;;  %v2815_v5 = vld [vmem:[%s4283_s1 + $0x20] sm:$0xff]   ;;  %v2816_v7 = vld [vmem:[%s4283_s1 + $0x28] sm:$0xff]  }
   0x3   :  { %549 = vmatprep.subr.bf16.mxu0 %v3219_v1  ;;  %v2829_v6 = vld [vmem:[%s4282_s0 + $0x4] ss:$8 sps:$4 sm:$0xff]   ;;  %v2817_v8 = vld [vmem:[%s4283_s1 + $0x30] sm:$0xff]   ;;  %v2818_v9 = vld [vmem:[%s4283_s1 + $0x38] sm:$0xff]  }
   0x4   :  { %579 = vmatprep.mubr.bf16.mxu0 %v2829_v6  ;;  %v2819_v10 = vld [vmem:[%s4283_s1 + $0x40] sm:$0xff]   ;;  %v2820_v11 = vld [vmem:[%s4283_s1 + $0x48] sm:$0xff]   ;;  %v2821_v12 = vld [vmem:[%s4283_s1 + $0x50] sm:$0xff]  }
   0x5   :  { %v2822_v13 = vld [vmem:[%s4283_s1 + $0x58] sm:$0xff]   ;;  %v2823_v14 = vld [vmem:[%s4283_s1 + $0x60] sm:$0xff]   ;;  %v2824_v15 = vld [vmem:[%s4283_s1 + $0x68] sm:$0xff]  }
   0x6   :  { %550 = vmatpush1.bf16.msra.mxu0 %v2812_v2  ;;  %v2825_v16 = vld [vmem:[%s4283_s1 + $0x70] sm:$0xff]   ;;  %v2826_v17 = vld [vmem:[%s4283_s1 + $0x78] sm:$0xff]  }
   0x7   :  { %551 = vmatprep.subr.bf16.mxu0 %v3219_v1 }
   0xa   :  { %552 = vmatpush1.bf16.msra.mxu0 %v2813_v3 }
   0xb   :  { %553 = vmatprep.subr.bf16.mxu0 %v3219_v1 }
   0xe   :  { %554 = vmatpush1.bf16.msra.mxu0 %v2814_v4 }
   0xf   :  { %555 = vmatprep.subr.bf16.mxu0 %v3219_v1 }
  0x12   :  { %556 = vmatpush1.bf16.msra.mxu0 %v2815_v5 }
  0x13   :  { %557 = vmatprep.subr.bf16.mxu0 %v3219_v1 }
  0x16   :  { %558 = vmatpush1.bf16.msra.mxu0 %v2816_v7 }
  0x17   :  { %559 = vmatprep.subr.bf16.mxu0 %v3219_v1 }
  0x1a   :  { %560 = vmatpush1.bf16.msra.mxu0 %v2817_v8 }
  0x1b   :  { %561 = vmatprep.subr.bf16.mxu0 %v3219_v1 }
  0x1e   :  { %562 = vmatpush1.bf16.msra.mxu0 %v2818_v9 }
  0x1f   :  { %563 = vmatprep.subr.bf16.mxu0 %v3219_v1 }
  0x22   :  { %564 = vmatpush1.bf16.msra.mxu0 %v2819_v10 }
  0x23   :  { %565 = vmatprep.subr.bf16.mxu0 %v3219_v1 }
  0x26   :  { %566 = vmatpush1.bf16.msra.mxu0 %v2820_v11 }
  0x27   :  { %567 = vmatprep.subr.bf16.mxu0 %v3219_v1 }
  0x2a   :  { %568 = vmatpush1.bf16.msra.mxu0 %v2821_v12 }
  0x2b   :  { %569 = vmatprep.subr.bf16.mxu0 %v3219_v1 }
  0x2e   :  { %570 = vmatpush1.bf16.msra.mxu0 %v2822_v13 }
  0x2f   :  { %571 = vmatprep.subr.bf16.mxu0 %v3219_v1 }
  0x32   :  { %572 = vmatpush1.bf16.msra.mxu0 %v2823_v14 }
  0x33   :  { %573 = vmatprep.subr.bf16.mxu0 %v3219_v1 }
  0x36   :  { %574 = vmatpush1.bf16.msra.mxu0 %v2824_v15 }
  0x37   :  { %575 = vmatprep.subr.bf16.mxu0 %v3219_v1 }
  0x3a   :  { %576 = vmatpush1.bf16.msra.mxu0 %v2825_v16 }
  0x3b   :  { %577 = vmatprep.subr.bf16.mxu0 %v3219_v1 }
  0x3c   :  { %12 = vsyncpa [#allocation3], 0  ;;  %v2827_v18 = vld [vmem:[%s4282_s0] ss:$8 sps:$4 sm:$0xff]   ;;  %v2830_v19 = vld [vmem:[%s4282_s0 + $0x14] ss:$8 sps:$4 sm:$0xff]  }
  0x3d   :  { %v2832_v20 = vld [vmem:[%s4282_s0 + $0x10] ss:$8 sps:$4 sm:$0xff]   ;;  %v2833_v21 = vld [vmem:[%s4282_s0 + $0x24] ss:$8 sps:$4 sm:$0xff]   ;;  %v2835_v22 = vld [vmem:[%s4282_s0 + $0x20] ss:$8 sps:$4 sm:$0xff]  }
  0x3e   :  { %578 = vmatpush1.bf16.msra.mxu0 %v2826_v17  ;;  %v2836_v23 = vld [vmem:[%s4282_s0 + $0x34] ss:$8 sps:$4 sm:$0xff]   ;;  %v2838_v24 = vld [vmem:[%s4282_s0 + $0x30] ss:$8 sps:$4 sm:$0xff]   ;;  %v2839_v25 = vld [vmem:[%s4282_s0 + $0x44] ss:$8 sps:$4 sm:$0xff]  }
  0x3f   :  { %v2841_v26 = vld [vmem:[%s4282_s0 + $0x40] ss:$8 sps:$4 sm:$0xff]   ;;  %v2842_v27 = vld [vmem:[%s4282_s0 + $0x54] ss:$8 sps:$4 sm:$0xff]   ;;  %v2844_v28 = vld [vmem:[%s4282_s0 + $0x50] ss:$8 sps:$4 sm:$0xff]  }
  0x40   :  { %v2845_v29 = vld [vmem:[%s4282_s0 + $0x64] ss:$8 sps:$4 sm:$0xff]   ;;  %v2847_v30 = vld [vmem:[%s4282_s0 + $0x60] ss:$8 sps:$4 sm:$0xff]   ;;  %v2848_v31 = vld [vmem:[%s4282_s0 + $0x74] ss:$8 sps:$4 sm:$0xff]  }
  0x41   :  { %580 = vmatmul.mubr.bf16.vlgmr.msra.gmra.mrb[0].mxu0 %v2827_v18  ;;  %v2850_v32 = vld [vmem:[%s4282_s0 + $0x70] ss:$8 sps:$4 sm:$0xff]   ;;  %v2851_v33 = vld [vmem:[%s4282_s0 + $0x84] ss:$8 sps:$4 sm:$0xff]   ;;  %v2853_v34 = vld [vmem:[%s4282_s0 + $0x80] ss:$8 sps:$4 sm:$0xff]  }
  0x42   :  { %587 = vmatprep.mubr.bf16.mxu0 %v2830_v19  ;;  %v2854_v35 = vld [vmem:[%s4282_s0 + $0x94] ss:$8 sps:$4 sm:$0xff]   ;;  %v2902_v36 = vld [vmem:[%s4285_s3] sm:$0xff]   ;;  %v2856_v37 = vld [vmem:[%s4282_s0 + $0x90] ss:$8 sps:$4 sm:$0xff]  }
  0x43   :  { %2647 = vmatprep.subr.bf16.mxu1 %v2902_v36  ;;  %v2857_v38 = vld [vmem:[%s4282_s0 + $0xa4] ss:$8 sps:$4 sm:$0xff]   ;;  %v2907_v40 = vld [vmem:[%s4285_s3 + $0x10] sm:$0xff]   ;;  %v2859_v41 = vld [vmem:[%s4282_s0 + $0xa0] ss:$8 sps:$4 sm:$0xff]  }
  0x44   :  { %2648 = vmatpush3.bf16.msra.mxu1 %v2902_v36  ;;  %v2906_v39 = vld [vmem:[%s4285_s3 + $0x8] sm:$0xff]   ;;  %v2860_v42 = vld [vmem:[%s4282_s0 + $0xb4] ss:$8 sps:$4 sm:$0xff]   ;;  %v2912_v44 = vld [vmem:[%s4285_s3 + $0x20] sm:$0xff]  }
  0x45   :  { %2649 = vmatprep.subr.bf16.mxu1 %v2906_v39  ;;  %v2911_v43 = vld [vmem:[%s4285_s3 + $0x18] sm:$0xff]   ;;  %v2863_v46 = vld [vmem:[%s4282_s0 + $0xc4] ss:$8 sps:$4 sm:$0xff]   ;;  %v2917_v48 = vld [vmem:[%s4285_s3 + $0x30] sm:$0xff]  }
  0x46   :  { %v2862_v45 = vld [vmem:[%s4282_s0 + $0xb0] ss:$8 sps:$4 sm:$0xff]   ;;  %v2916_v47 = vld [vmem:[%s4285_s3 + $0x28] sm:$0xff]   ;;  %v2866_v50 = vld [vmem:[%s4282_s0 + $0xd4] ss:$8 sps:$4 sm:$0xff]  }
  0x47   :  { %v2865_v49 = vld [vmem:[%s4282_s0 + $0xc0] ss:$8 sps:$4 sm:$0xff]   ;;  %v2921_v51 = vld [vmem:[%s4285_s3 + $0x38] sm:$0xff]   ;;  %v2869_v53 = vld [vmem:[%s4282_s0 + $0xe4] ss:$8 sps:$4 sm:$0xff]  }
  0x48   :  { %2650 = vmatpush3.bf16.msra.mxu1 %v2906_v39  ;;  %v2868_v52 = vld [vmem:[%s4282_s0 + $0xd0] ss:$8 sps:$4 sm:$0xff]   ;;  %v2871_v54 = vld [vmem:[%s4282_s0 + $0xe0] ss:$8 sps:$4 sm:$0xff]   ;;  %v2872_v55 = vld [vmem:[%s4282_s0 + $0xf4] ss:$8 sps:$4 sm:$0xff]  }
  0x49   :  { %588 = vmatmul.mubr.bf16.gmra.mrb[4].mxu0 %v2832_v20  ;;  %2651 = vmatprep.subr.bf16.mxu1 %v2907_v40  ;;  %v2874_v56 = vld [vmem:[%s4282_s0 + $0xf0] ss:$8 sps:$4 sm:$0xff]   ;;  %v2875_v57 = vld [vmem:[%s4282_s0 + $0x104] ss:$8 sps:$4 sm:$0xff]   ;;  %v2877_v58 = vld [vmem:[%s4282_s0 + $0x100] ss:$8 sps:$4 sm:$0xff]  }
  0x4a   :  { %595 = vmatprep.mubr.bf16.mxu0 %v2833_v21  ;;  %v2878_v59 = vld [vmem:[%s4282_s0 + $0x114] ss:$8 sps:$4 sm:$0xff]   ;;  %v2880_v60 = vld [vmem:[%s4282_s0 + $0x110] ss:$8 sps:$4 sm:$0xff]   ;;  %v2881_v61 = vld [vmem:[%s4282_s0 + $0x124] ss:$8 sps:$4 sm:$0xff]  }
  0x4b   :  { %v2883_v62 = vld [vmem:[%s4282_s0 + $0x120] ss:$8 sps:$4 sm:$0xff]   ;;  %v2884_v63 = vld [vmem:[%s4282_s0 + $0x134] ss:$8 sps:$4 sm:$0xff]   ;;  %v2886_v0 = vld [vmem:[%s4282_s0 + $0x130] ss:$8 sps:$4 sm:$0xff]  }
  0x4c   :  { %2652 = vmatpush3.bf16.msra.mxu1 %v2907_v40  ;;  %v2887_v1 = vld [vmem:[%s4282_s0 + $0x144] ss:$8 sps:$4 sm:$0xff]   ;;  %v2889_v2 = vld [vmem:[%s4282_s0 + $0x140] ss:$8 sps:$4 sm:$0xff]   ;;  %v2890_v3 = vld [vmem:[%s4282_s0 + $0x154] ss:$8 sps:$4 sm:$0xff]  }
  0x4d   :  { %2653 = vmatprep.subr.bf16.mxu1 %v2911_v43  ;;  %v2892_v4 = vld [vmem:[%s4282_s0 + $0x150] ss:$8 sps:$4 sm:$0xff]   ;;  %v2893_v5 = vld [vmem:[%s4282_s0 + $0x164] ss:$8 sps:$4 sm:$0xff]   ;;  %v2895_v6 = vld [vmem:[%s4282_s0 + $0x160] ss:$8 sps:$4 sm:$0xff]  }
  0x4e   :  { %v2896_v7 = vld [vmem:[%s4282_s0 + $0x174] ss:$8 sps:$4 sm:$0xff]   ;;  %v2898_v8 = vld [vmem:[%s4282_s0 + $0x170] ss:$8 sps:$4 sm:$0xff]   ;;  %v2899_v9 = vld [vmem:[%s4282_s0 + $0x184] ss:$8 sps:$4 sm:$0xff]  }
  0x4f   :  { %v2901_v10 = vld [vmem:[%s4282_s0 + $0x180] ss:$8 sps:$4 sm:$0xff]   ;;  %v2903_v11 = vld [vmem:[%s4282_s0 + $0x194] ss:$8 sps:$4 sm:$0xff]   ;;  %v2905_v12 = vld [vmem:[%s4282_s0 + $0x190] ss:$8 sps:$4 sm:$0xff]  }
  0x50   :  { %2654 = vmatpush3.bf16.msra.mxu1 %v2911_v43  ;;  %v2908_v13 = vld [vmem:[%s4282_s0 + $0x1a4] ss:$8 sps:$4 sm:$0xff]   ;;  %v2910_v14 = vld [vmem:[%s4282_s0 + $0x1a0] ss:$8 sps:$4 sm:$0xff]   ;;  %v2913_v15 = vld [vmem:[%s4282_s0 + $0x1b4] ss:$8 sps:$4 sm:$0xff]  }
  0x51   :  { %596 = vmatmul.mubr.bf16.gmra.mrb[8].mxu0 %v2835_v22  ;;  %2655 = vmatprep.subr.bf16.mxu1 %v2912_v44  ;;  %v3503_v16 = vld [vmem:[%s4284_s2] ss:$0 sm:$0xff]  ;;  %v2915_v20 = vld [vmem:[%s4282_s0 + $0x1b0] ss:$8 sps:$4 sm:$0xff]   ;;  %v2918_v22 = vld [vmem:[%s4282_s0 + $0x1c4] ss:$8 sps:$4 sm:$0xff]  }
  0x52   :  { %603 = vmatprep.mubr.bf16.mxu0 %v2836_v23  ;;  %v2931_v36 = vld [vmem:[%s4287_s5] sm:$0xff]   ;;  %v2924_v43 = vld [vmem:[%s4282_s0 + $0x1d0] ss:$8 sps:$4 sm:$0xff]  }
  0x54   :  { %2656 = vmatpush3.bf16.msra.mxu1 %v2912_v44 }
  0x55   :  { %2657 = vmatprep.subr.bf16.mxu1 %v2916_v47 }
  0x58   :  { %2658 = vmatpush3.bf16.msra.mxu1 %v2916_v47 }
  0x59   :  { %604 = vmatmul.mubr.bf16.gmra.mrb[12].mxu0 %v2838_v24  ;;  %2659 = vmatprep.subr.bf16.mxu1 %v2917_v48 }
  0x5a   :  { %611 = vmatprep.mubr.bf16.mxu0 %v2839_v25 }
  0x5c   :  { %2660 = vmatpush3.bf16.msra.mxu1 %v2917_v48 }
  0x5d   :  { %2661 = vmatprep.subr.bf16.mxu1 %v2921_v51 }
  0x60   :  { %2662 = vmatpush3.bf16.msra.mxu1 %v2921_v51 }
  0x61   :  { %612 = vmatmul.mubr.bf16.gmra.mrb[16].mxu0 %v2841_v26  ;;  %2727 = vmatprep.subr.bf16.mxu1 %v2931_v36 }
  0x62   :  { %619 = vmatprep.mubr.bf16.mxu0 %v2842_v27 }
  0x69   :  { %620 = vmatmul.mubr.bf16.gmra.mrb[20].mxu0 %v2844_v28 }
  0x6a   :  { %627 = vmatprep.mubr.bf16.mxu0 %v2845_v29 }
  0x71   :  { %628 = vmatmul.mubr.bf16.gmra.mrb[24].mxu0 %v2847_v30 }
  0x72   :  { %635 = vmatprep.mubr.bf16.mxu0 %v2848_v31  ;;  %v2920_v31 = vld [vmem:[%s4282_s0 + $0x1c0] ss:$8 sps:$4 sm:$0xff]  }
  0x79   :  { %636 = vmatmul.mubr.bf16.gmra.mrb[28].mxu0 %v2850_v32 }
  0x7a   :  { %643 = vmatprep.mubr.bf16.mxu0 %v2851_v33  ;;  %v2922_v33 = vld [vmem:[%s4282_s0 + $0x1d4] ss:$8 sps:$4 sm:$0xff]  }
  0x81   :  { %644 = vmatmul.mubr.bf16.gmra.mrb[32].mxu0 %v2853_v34 }
  0x82   :  { %651 = vmatprep.mubr.bf16.mxu0 %v2854_v35 }
  0x89   :  { %652 = vmatmul.mubr.bf16.gmra.mrb[36].mxu0 %v2856_v37 }
  0x8a   :  { %659 = vmatprep.mubr.bf16.mxu0 %v2857_v38 }
  0x91   :  { %660 = vmatmul.mubr.bf16.gmra.mrb[40].mxu0 %v2859_v41 }
  0x92   :  { %667 = vmatprep.mubr.bf16.mxu0 %v2860_v42 }
  0x99   :  { %668 = vmatmul.mubr.bf16.gmra.mrb[44].mxu0 %v2862_v45  ;;  %v2925_v45 = vld [vmem:[%s4282_s0 + $0x1e4] ss:$8 sps:$4 sm:$0xff]  }
  0x9a   :  { %675 = vmatprep.mubr.bf16.mxu0 %v2863_v46 }
  0xa1   :  { %676 = vmatmul.mubr.bf16.gmra.mrb[48].mxu0 %v2865_v49 }
  0xa2   :  { %683 = vmatprep.mubr.bf16.mxu0 %v2866_v50 }
  0xa9   :  { %684 = vmatmul.mubr.bf16.gmra.mrb[52].mxu0 %v2868_v52 }
  0xaa   :  { %691 = vmatprep.mubr.bf16.mxu0 %v2869_v53 }
  0xb1   :  { %692 = vmatmul.mubr.bf16.gmra.mrb[56].mxu0 %v2871_v54  ;;  %v2927_v54 = vld [vmem:[%s4282_s0 + $0x1e0] ss:$8 sps:$4 sm:$0xff]  }
  0xb2   :  { %699 = vmatprep.mubr.bf16.mxu0 %v2872_v55 }
  0xb9   :  { %700 = vmatmul.mubr.bf16.gmra.mrb[60].mxu0 %v2874_v56  ;;  %v2928_v56 = vld [vmem:[%s4282_s0 + $0x1f4] ss:$8 sps:$4 sm:$0xff]  }
  0xba   :  { %707 = vmatprep.mubr.bf16.mxu0 %v2875_v57 }
  0xc1   :  { %708 = vmatmul.mubr.bf16.gmra.mrb[64].mxu0 %v2877_v58 }
  0xc2   :  { %715 = vmatprep.mubr.bf16.mxu0 %v2878_v59  ;;  %v2932_v59 = vld [vmem:[%s4287_s5 + $0x8] sm:$0xff]  }
  0xc9   :  { %716 = vmatmul.mubr.bf16.gmra.mrb[68].mxu0 %v2880_v60 }
  0xca   :  { %723 = vmatprep.mubr.bf16.mxu0 %v2881_v61 }
  0xd1   :  { %724 = vmatmul.mubr.bf16.gmra.mrb[72].mxu0 %v2883_v62 }
  0xd2   :  { %731 = vmatprep.mubr.bf16.mxu0 %v2884_v63 }
  0xd9   :  { %732 = vmatmul.mubr.bf16.gmra.mrb[76].mxu0 %v2886_v0 }
  0xda   :  { %739 = vmatprep.mubr.bf16.mxu0 %v2887_v1 }
  0xe1   :  { %740 = vmatmul.mubr.bf16.gmra.mrb[80].mxu0 %v2889_v2  ;;  %v2930_v2 = vld [vmem:[%s4282_s0 + $0x1f0] ss:$8 sps:$4 sm:$0xff]  }
  0xe2   :  { %747 = vmatprep.mubr.bf16.mxu0 %v2890_v3 }
  0xe9   :  { %748 = vmatmul.mubr.bf16.gmra.mrb[84].mxu0 %v2892_v4 }
  0xea   :  { %755 = vmatprep.mubr.bf16.mxu0 %v2893_v5 }
  0xf1   :  { %756 = vmatmul.mubr.bf16.gmra.mrb[88].mxu0 %v2895_v6 }
  0xf2   :  { %763 = vmatprep.mubr.bf16.mxu0 %v2896_v7 }
  0xf9   :  { %764 = vmatmul.mubr.bf16.gmra.mrb[92].mxu0 %v2898_v8 }
  0xfa   :  { %771 = vmatprep.mubr.bf16.mxu0 %v2899_v9 }
 0x101   :  { %772 = vmatmul.mubr.bf16.gmra.mrb[96].mxu0 %v2901_v10 }
 0x102   :  { %779 = vmatprep.mubr.bf16.mxu0 %v2903_v11 }
 0x109   :  { %780 = vmatmul.mubr.bf16.gmra.mrb[100].mxu0 %v2905_v12 }
 0x10a   :  { %787 = vmatprep.mubr.bf16.mxu0 %v2908_v13 }
 0x111   :  { %788 = vmatmul.mubr.bf16.gmra.mrb[104].mxu0 %v2910_v14 }
 0x112   :  { %795 = vmatprep.mubr.bf16.mxu0 %v2913_v15  ;;  %v2933_v15 = vld [vmem:[%s4287_s5 + $0x10] sm:$0xff]  }
 0x114   :  { %v581_v17 = vpop.f32.mrb[0].mxu0 }
 0x115   :  { %v582_v18 = vadd.f32 %v3503_v16, %v581_v17  ;;  %v583_v19 = vpop.f32.mrb[1].mxu0 }
 0x116   :  { %v584_v21 = vpop.f32.mrb[2].mxu0 }
 0x117   :  { %v585_v23 = vadd.f32 %v3503_v16, %v584_v21  ;;  %v586_v24 = vpop.f32.mrb[3].mxu0  ;;  %v836_v25 = vmax.f32 %v582_v18, 0.0 }
 0x119   :  { %v837_v26 = vmax.f32 %v585_v23, 0.0  ;;  %796 = vmatmul.mubr.bf16.gmra.mrb[108].mxu0 %v2915_v20 }
 0x11a   :  { %803 = vmatprep.mubr.bf16.mxu0 %v2918_v22 }
 0x11b   :  { %v900_v27 = vpack.c.bf16 %v837_v26, %v836_v25 }
 0x11c   :  { %v589_v28 = vpop.f32.mrb[4].mxu0 }
 0x11d   :  { %v590_v29 = vadd.f32 %v3503_v16, %v589_v28  ;;  %v591_v30 = vpop.f32.mrb[5].mxu0  ;;  %2663 = vmatprep.mubr.bf16.mxu1 %v900_v27 }
 0x11e   :  { %v592_v32 = vpop.f32.mrb[6].mxu0 }
 0x11f   :  { %v593_v34 = vadd.f32 %v3503_v16, %v592_v32  ;;  %v594_v35 = vpop.f32.mrb[7].mxu0  ;;  %v838_v37 = vmax.f32 %v590_v29, 0.0 }
 0x120   :  { %v2934_v35 = vld [vmem:[%s4287_s5 + $0x18] sm:$0xff]  }
 0x121   :  { %v839_v38 = vmax.f32 %v593_v34, 0.0  ;;  %804 = vmatmul.mubr.bf16.gmra.mrb[112].mxu0 %v2920_v31 }
 0x122   :  { %811 = vmatprep.mubr.bf16.mxu0 %v2922_v33 }
 0x123   :  { %v901_v39 = vpack.c.bf16 %v839_v38, %v838_v37 }
 0x124   :  { %v597_v40 = vpop.f32.mrb[8].mxu0 }
 0x125   :  { %v598_v41 = vadd.f32 %v3503_v16, %v597_v40  ;;  %v599_v42 = vpop.f32.mrb[9].mxu0  ;;  %2664 = vmatmul.mubr.bf16.vlgmr.msra.gmra.mrb[0].mxu1 %v901_v39 }
 0x126   :  { %v600_v44 = vpop.f32.mrb[10].mxu0  ;;  %2728 = vmatpush3.bf16.msra.mxu1 %v2931_v36 }
 0x127   :  { %v601_v46 = vadd.f32 %v3503_v16, %v600_v44  ;;  %v602_v47 = vpop.f32.mrb[11].mxu0  ;;  %v840_v48 = vmax.f32 %v598_v41, 0.0  ;;  %2729 = vmatprep.subr.bf16.mxu1 %v2932_v59 }
 0x129   :  { %v841_v49 = vmax.f32 %v601_v46, 0.0  ;;  %812 = vmatmul.mubr.bf16.gmra.mrb[116].mxu0 %v2924_v43 }
 0x12a   :  { %819 = vmatprep.mubr.bf16.mxu0 %v2925_v45  ;;  %2730 = vmatpush3.bf16.msra.mxu1 %v2932_v59 }
 0x12b   :  { %v902_v50 = vpack.c.bf16 %v841_v49, %v840_v48  ;;  %2731 = vmatprep.subr.bf16.mxu1 %v2933_v15 }
 0x12c   :  { %v605_v51 = vpop.f32.mrb[12].mxu0 }
 0x12d   :  { %v606_v52 = vadd.f32 %v3503_v16, %v605_v51  ;;  %v607_v53 = vpop.f32.mrb[13].mxu0  ;;  %2667 = vmatprep.mubr.bf16.mxu1 %v902_v50 }
 0x12e   :  { %v608_v55 = vpop.f32.mrb[14].mxu0  ;;  %2732 = vmatpush3.bf16.msra.mxu1 %v2933_v15 }
 0x12f   :  { %v609_v57 = vadd.f32 %v3503_v16, %v608_v55  ;;  %v610_v58 = vpop.f32.mrb[15].mxu0  ;;  %v842_v60 = vmax.f32 %v606_v52, 0.0  ;;  %2733 = vmatprep.subr.bf16.mxu1 %v2934_v35 }
 0x131   :  { %v843_v61 = vmax.f32 %v609_v57, 0.0  ;;  %820 = vmatmul.mubr.bf16.gmra.mrb[120].mxu0 %v2927_v54  ;;  %v2935_v54 = vld [vmem:[%s4287_s5 + $0x20] sm:$0xff]  }
 0x132   :  { %827 = vmatprep.mubr.bf16.mxu0 %v2928_v56  ;;  %2734 = vmatpush3.bf16.msra.mxu1 %v2934_v35 }
 0x133   :  { %v903_v62 = vpack.c.bf16 %v843_v61, %v842_v60  ;;  %2735 = vmatprep.subr.bf16.mxu1 %v2935_v54 }
 0x134   :  { %v613_v63 = vpop.f32.mrb[16].mxu0 }
 0x135   :  { %v614_v0 = vadd.f32 %v3503_v16, %v613_v63  ;;  %v615_v1 = vpop.f32.mrb[17].mxu0  ;;  %2668 = vmatmul.mubr.bf16.gmra.mrb[4].mxu1 %v903_v62 }
 0x136   :  { %v616_v3 = vpop.f32.mrb[18].mxu0  ;;  %2736 = vmatpush3.bf16.msra.mxu1 %v2935_v54 }
 0x137   :  { %v617_v4 = vadd.f32 %v3503_v16, %v616_v3  ;;  %v618_v5 = vpop.f32.mrb[19].mxu0  ;;  %v844_v6 = vmax.f32 %v614_v0, 0.0 }
 0x139   :  { %v845_v7 = vmax.f32 %v617_v4, 0.0  ;;  %828 = vmatmul.mubr.bf16.gmra.mrb[124].mxu0 %v2930_v2 }
 0x13b   :  { %v904_v8 = vpack.c.bf16 %v845_v7, %v844_v6 }
 0x13c   :  { %v621_v9 = vpop.f32.mrb[20].mxu0 }
 0x13d   :  { %v622_v10 = vadd.f32 %v3503_v16, %v621_v9  ;;  %v623_v11 = vpop.f32.mrb[21].mxu0  ;;  %2671 = vmatprep.mubr.bf16.mxu1 %v904_v8  ;;  %v2936_v9 = vld [vmem:[%s4287_s5 + $0x28] sm:$0xff]  }
 0x13e   :  { %v624_v12 = vpop.f32.mrb[22].mxu0  ;;  %2737 = vmatprep.subr.bf16.mxu1 %v2936_v9 }
 0x13f   :  { %v625_v13 = vadd.f32 %v3503_v16, %v624_v12  ;;  %v626_v14 = vpop.f32.mrb[23].mxu0  ;;  %v846_v17 = vmax.f32 %v622_v10, 0.0  ;;  %2738 = vmatpush3.bf16.msra.mxu1 %v2936_v9 }
 0x141   :  { %v847_v18 = vmax.f32 %v625_v13, 0.0 }
 0x143   :  { %v905_v19 = vpack.c.bf16 %v847_v18, %v846_v17 }
 0x144   :  { %v629_v20 = vpop.f32.mrb[24].mxu0 }
 0x145   :  { %v630_v21 = vadd.f32 %v3503_v16, %v629_v20  ;;  %v631_v22 = vpop.f32.mrb[25].mxu0  ;;  %2672 = vmatmul.mubr.bf16.gmra.mrb[8].mxu1 %v905_v19 }
 0x146   :  { %v632_v23 = vpop.f32.mrb[26].mxu0 }
 0x147   :  { %v633_v24 = vadd.f32 %v3503_v16, %v632_v23  ;;  %v634_v25 = vpop.f32.mrb[27].mxu0  ;;  %v848_v26 = vmax.f32 %v630_v21, 0.0 }
 0x149   :  { %v849_v27 = vmax.f32 %v633_v24, 0.0 }
 0x14b   :  { %v906_v28 = vpack.c.bf16 %v849_v27, %v848_v26 }
 0x14c   :  { %v637_v29 = vpop.f32.mrb[28].mxu0 }
 0x14d   :  { %v638_v30 = vadd.f32 %v3503_v16, %v637_v29  ;;  %v639_v31 = vpop.f32.mrb[29].mxu0  ;;  %2675 = vmatprep.mubr.bf16.mxu1 %v906_v28  ;;  %v2937_v29 = vld [vmem:[%s4287_s5 + $0x30] sm:$0xff]  }
 0x14e   :  { %v640_v32 = vpop.f32.mrb[30].mxu0  ;;  %2739 = vmatprep.subr.bf16.mxu1 %v2937_v29 }
 0x14f   :  { %v641_v33 = vadd.f32 %v3503_v16, %v640_v32  ;;  %v642_v34 = vpop.f32.mrb[31].mxu0  ;;  %v850_v36 = vmax.f32 %v638_v30, 0.0  ;;  %2740 = vmatpush3.bf16.msra.mxu1 %v2937_v29 }
 0x151   :  { %v851_v37 = vmax.f32 %v641_v33, 0.0 }
 0x153   :  { %v907_v38 = vpack.c.bf16 %v851_v37, %v850_v36 }
 0x154   :  { %v645_v39 = vpop.f32.mrb[32].mxu0 }
 0x155   :  { %v646_v40 = vadd.f32 %v3503_v16, %v645_v39  ;;  %v647_v41 = vpop.f32.mrb[33].mxu0  ;;  %2676 = vmatmul.mubr.bf16.gmra.mrb[12].mxu1 %v907_v38 }
 0x156   :  { %v648_v42 = vpop.f32.mrb[34].mxu0 }
 0x157   :  { %v649_v43 = vadd.f32 %v3503_v16, %v648_v42  ;;  %v650_v44 = vpop.f32.mrb[35].mxu0  ;;  %v852_v45 = vmax.f32 %v646_v40, 0.0 }
 0x159   :  { %v853_v46 = vmax.f32 %v649_v43, 0.0 }
 0x15b   :  { %v908_v47 = vpack.c.bf16 %v853_v46, %v852_v45 }
 0x15c   :  { %v653_v48 = vpop.f32.mrb[36].mxu0 }
 0x15d   :  { %v654_v49 = vadd.f32 %v3503_v16, %v653_v48  ;;  %v655_v50 = vpop.f32.mrb[37].mxu0  ;;  %2679 = vmatprep.mubr.bf16.mxu1 %v908_v47  ;;  %v2938_v48 = vld [vmem:[%s4287_s5 + $0x38] sm:$0xff]  }
 0x15e   :  { %v656_v51 = vpop.f32.mrb[38].mxu0  ;;  %2741 = vmatprep.subr.bf16.mxu1 %v2938_v48 }
 0x15f   :  { %v657_v52 = vadd.f32 %v3503_v16, %v656_v51  ;;  %v658_v53 = vpop.f32.mrb[39].mxu0  ;;  %v854_v55 = vmax.f32 %v654_v49, 0.0  ;;  %2742 = vmatpush3.bf16.msra.mxu1 %v2938_v48 }
 0x161   :  { %v855_v56 = vmax.f32 %v657_v52, 0.0 }
 0x163   :  { %v909_v57 = vpack.c.bf16 %v855_v56, %v854_v55 }
 0x164   :  { %v661_v58 = vpop.f32.mrb[40].mxu0 }
 0x165   :  { %v662_v59 = vadd.f32 %v3503_v16, %v661_v58  ;;  %v663_v60 = vpop.f32.mrb[41].mxu0  ;;  %2680 = vmatmul.mubr.bf16.gmra.mrb[16].mxu1 %v909_v57 }
 0x166   :  { %v664_v61 = vpop.f32.mrb[42].mxu0 }
 0x167   :  { %v665_v62 = vadd.f32 %v3503_v16, %v664_v61  ;;  %v666_v63 = vpop.f32.mrb[43].mxu0  ;;  %v856_v0 = vmax.f32 %v662_v59, 0.0 }
 0x169   :  { %v857_v1 = vmax.f32 %v665_v62, 0.0 }
 0x16b   :  { %v910_v2 = vpack.c.bf16 %v857_v1, %v856_v0 }
 0x16c   :  { %v669_v3 = vpop.f32.mrb[44].mxu0 }
 0x16d   :  { %v670_v4 = vadd.f32 %v3503_v16, %v669_v3  ;;  %v671_v5 = vpop.f32.mrb[45].mxu0  ;;  %2683 = vmatprep.mubr.bf16.mxu1 %v910_v2 }
 0x16e   :  { %v672_v6 = vpop.f32.mrb[46].mxu0 }
 0x16f   :  { %v673_v7 = vadd.f32 %v3503_v16, %v672_v6  ;;  %v674_v8 = vpop.f32.mrb[47].mxu0  ;;  %v858_v10 = vmax.f32 %v670_v4, 0.0 }
 0x171   :  { %v859_v11 = vmax.f32 %v673_v7, 0.0 }
 0x173   :  { %v911_v12 = vpack.c.bf16 %v859_v11, %v858_v10 }
 0x174   :  { %v677_v13 = vpop.f32.mrb[48].mxu0 }
 0x175   :  { %v678_v14 = vadd.f32 %v3503_v16, %v677_v13  ;;  %v679_v15 = vpop.f32.mrb[49].mxu0  ;;  %2684 = vmatmul.mubr.bf16.gmra.mrb[20].mxu1 %v911_v12 }
 0x176   :  { %v680_v17 = vpop.f32.mrb[50].mxu0 }
 0x177   :  { %v681_v18 = vadd.f32 %v3503_v16, %v680_v17  ;;  %v682_v19 = vpop.f32.mrb[51].mxu0  ;;  %v860_v20 = vmax.f32 %v678_v14, 0.0 }
 0x179   :  { %v861_v21 = vmax.f32 %v681_v18, 0.0 }
 0x17b   :  { %v912_v22 = vpack.c.bf16 %v861_v21, %v860_v20 }
 0x17c   :  { %v685_v23 = vpop.f32.mrb[52].mxu0 }
 0x17d   :  { %v686_v24 = vadd.f32 %v3503_v16, %v685_v23  ;;  %v687_v25 = vpop.f32.mrb[53].mxu0  ;;  %2687 = vmatprep.mubr.bf16.mxu1 %v912_v22 }
 0x17e   :  { %v688_v26 = vpop.f32.mrb[54].mxu0 }
 0x17f   :  { %v689_v27 = vadd.f32 %v3503_v16, %v688_v26  ;;  %v690_v28 = vpop.f32.mrb[55].mxu0  ;;  %v862_v30 = vmax.f32 %v686_v24, 0.0 }
 0x181   :  { %v863_v31 = vmax.f32 %v689_v27, 0.0 }
 0x183   :  { %v913_v32 = vpack.c.bf16 %v863_v31, %v862_v30 }
 0x184   :  { %v693_v33 = vpop.f32.mrb[56].mxu0 }
 0x185   :  { %v694_v34 = vadd.f32 %v3503_v16, %v693_v33  ;;  %v695_v35 = vpop.f32.mrb[57].mxu0  ;;  %2688 = vmatmul.mubr.bf16.gmra.mrb[24].mxu1 %v913_v32 }
 0x186   :  { %v696_v36 = vpop.f32.mrb[58].mxu0 }
 0x187   :  { %v697_v37 = vadd.f32 %v3503_v16, %v696_v36  ;;  %v698_v38 = vpop.f32.mrb[59].mxu0  ;;  %v864_v39 = vmax.f32 %v694_v34, 0.0 }
 0x189   :  { %v865_v40 = vmax.f32 %v697_v37, 0.0 }
 0x18b   :  { %v914_v41 = vpack.c.bf16 %v865_v40, %v864_v39 }
 0x18c   :  { %v701_v42 = vpop.f32.mrb[60].mxu0 }
 0x18d   :  { %v702_v43 = vadd.f32 %v3503_v16, %v701_v42  ;;  %v703_v44 = vpop.f32.mrb[61].mxu0  ;;  %2691 = vmatprep.mubr.bf16.mxu1 %v914_v41 }
 0x18e   :  { %v704_v45 = vpop.f32.mrb[62].mxu0 }
 0x18f   :  { %v705_v46 = vadd.f32 %v3503_v16, %v704_v45  ;;  %v706_v47 = vpop.f32.mrb[63].mxu0  ;;  %v866_v49 = vmax.f32 %v702_v43, 0.0 }
 0x191   :  { %v867_v50 = vmax.f32 %v705_v46, 0.0 }
 0x193   :  { %v915_v51 = vpack.c.bf16 %v867_v50, %v866_v49 }
 0x194   :  { %v709_v52 = vpop.f32.mrb[64].mxu0 }
 0x195   :  { %v710_v53 = vadd.f32 %v3503_v16, %v709_v52  ;;  %v711_v54 = vpop.f32.mrb[65].mxu0  ;;  %2692 = vmatmul.mubr.bf16.gmra.mrb[28].mxu1 %v915_v51 }
 0x196   :  { %v712_v55 = vpop.f32.mrb[66].mxu0 }
 0x197   :  { %v713_v56 = vadd.f32 %v3503_v16, %v712_v55  ;;  %v714_v57 = vpop.f32.mrb[67].mxu0  ;;  %v868_v58 = vmax.f32 %v710_v53, 0.0 }
 0x199   :  { %v869_v59 = vmax.f32 %v713_v56, 0.0 }
 0x19b   :  { %v916_v60 = vpack.c.bf16 %v869_v59, %v868_v58 }
 0x19c   :  { %v717_v61 = vpop.f32.mrb[68].mxu0 }
 0x19d   :  { %v718_v62 = vadd.f32 %v3503_v16, %v717_v61  ;;  %v719_v63 = vpop.f32.mrb[69].mxu0  ;;  %2695 = vmatprep.mubr.bf16.mxu1 %v916_v60 }
 0x19e   :  { %v720_v0 = vpop.f32.mrb[70].mxu0 }
 0x19f   :  { %v721_v1 = vadd.f32 %v3503_v16, %v720_v0  ;;  %v722_v2 = vpop.f32.mrb[71].mxu0  ;;  %v870_v3 = vmax.f32 %v718_v62, 0.0 }
 0x1a1   :  { %v871_v4 = vmax.f32 %v721_v1, 0.0 }
 0x1a3   :  { %v917_v5 = vpack.c.bf16 %v871_v4, %v870_v3 }
 0x1a4   :  { %v725_v6 = vpop.f32.mrb[72].mxu0 }
 0x1a5   :  { %v726_v7 = vadd.f32 %v3503_v16, %v725_v6  ;;  %v727_v8 = vpop.f32.mrb[73].mxu0  ;;  %2696 = vmatmul.mubr.bf16.gmra.mrb[32].mxu1 %v917_v5 }
 0x1a6   :  { %v728_v9 = vpop.f32.mrb[74].mxu0 }
 0x1a7   :  { %v729_v10 = vadd.f32 %v3503_v16, %v728_v9  ;;  %v730_v11 = vpop.f32.mrb[75].mxu0  ;;  %v872_v12 = vmax.f32 %v726_v7, 0.0 }
 0x1a9   :  { %v873_v13 = vmax.f32 %v729_v10, 0.0 }
 0x1ab   :  { %v918_v14 = vpack.c.bf16 %v873_v13, %v872_v12 }
 0x1ac   :  { %v733_v15 = vpop.f32.mrb[76].mxu0 }
 0x1ad   :  { %v734_v17 = vadd.f32 %v3503_v16, %v733_v15  ;;  %v735_v18 = vpop.f32.mrb[77].mxu0  ;;  %2699 = vmatprep.mubr.bf16.mxu1 %v918_v14 }
 0x1ae   :  { %v736_v19 = vpop.f32.mrb[78].mxu0 }
 0x1af   :  { %v737_v20 = vadd.f32 %v3503_v16, %v736_v19  ;;  %v738_v21 = vpop.f32.mrb[79].mxu0  ;;  %v874_v22 = vmax.f32 %v734_v17, 0.0 }
 0x1b1   :  { %v875_v23 = vmax.f32 %v737_v20, 0.0 }
 0x1b3   :  { %v919_v24 = vpack.c.bf16 %v875_v23, %v874_v22 }
 0x1b4   :  { %v741_v25 = vpop.f32.mrb[80].mxu0 }
 0x1b5   :  { %v742_v26 = vadd.f32 %v3503_v16, %v741_v25  ;;  %v743_v27 = vpop.f32.mrb[81].mxu0  ;;  %2700 = vmatmul.mubr.bf16.gmra.mrb[36].mxu1 %v919_v24 }
 0x1b6   :  { %v744_v28 = vpop.f32.mrb[82].mxu0 }
 0x1b7   :  { %v745_v29 = vadd.f32 %v3503_v16, %v744_v28  ;;  %v746_v30 = vpop.f32.mrb[83].mxu0  ;;  %v876_v31 = vmax.f32 %v742_v26, 0.0 }
 0x1b9   :  { %v877_v32 = vmax.f32 %v745_v29, 0.0 }
 0x1bb   :  { %v920_v33 = vpack.c.bf16 %v877_v32, %v876_v31 }
 0x1bc   :  { %v749_v34 = vpop.f32.mrb[84].mxu0 }
 0x1bd   :  { %v750_v35 = vadd.f32 %v3503_v16, %v749_v34  ;;  %v751_v36 = vpop.f32.mrb[85].mxu0  ;;  %2703 = vmatprep.mubr.bf16.mxu1 %v920_v33 }
 0x1be   :  { %v752_v37 = vpop.f32.mrb[86].mxu0 }
 0x1bf   :  { %v753_v38 = vadd.f32 %v3503_v16, %v752_v37  ;;  %v754_v39 = vpop.f32.mrb[87].mxu0  ;;  %v878_v40 = vmax.f32 %v750_v35, 0.0 }
 0x1c1   :  { %v879_v41 = vmax.f32 %v753_v38, 0.0  ;;  %v3616_v38 = vld [vmem:[%s4286_s4] ss:$0 sm:$0xff] }
 0x1c3   :  { %v921_v42 = vpack.c.bf16 %v879_v41, %v878_v40 }
 0x1c4   :  { %v757_v43 = vpop.f32.mrb[88].mxu0 }
 0x1c5   :  { %v758_v44 = vadd.f32 %v3503_v16, %v757_v43  ;;  %v759_v45 = vpop.f32.mrb[89].mxu0  ;;  %2704 = vmatmul.mubr.bf16.gmra.mrb[40].mxu1 %v921_v42 }
 0x1c6   :  { %v760_v46 = vpop.f32.mrb[90].mxu0 }
 0x1c7   :  { %v761_v47 = vadd.f32 %v3503_v16, %v760_v46  ;;  %v762_v48 = vpop.f32.mrb[91].mxu0  ;;  %v880_v49 = vmax.f32 %v758_v44, 0.0 }
 0x1c9   :  { %v881_v50 = vmax.f32 %v761_v47, 0.0 }
 0x1cb   :  { %v922_v51 = vpack.c.bf16 %v881_v50, %v880_v49 }
 0x1cc   :  { %v765_v52 = vpop.f32.mrb[92].mxu0 }
 0x1cd   :  { %v766_v53 = vadd.f32 %v3503_v16, %v765_v52  ;;  %v767_v54 = vpop.f32.mrb[93].mxu0  ;;  %2707 = vmatprep.mubr.bf16.mxu1 %v922_v51 }
 0x1ce   :  { %v768_v55 = vpop.f32.mrb[94].mxu0 }
 0x1cf   :  { %v769_v56 = vadd.f32 %v3503_v16, %v768_v55  ;;  %v770_v57 = vpop.f32.mrb[95].mxu0  ;;  %v882_v58 = vmax.f32 %v766_v53, 0.0 }
 0x1d1   :  { %v883_v59 = vmax.f32 %v769_v56, 0.0 }
 0x1d3   :  { %v923_v60 = vpack.c.bf16 %v883_v59, %v882_v58 }
 0x1d4   :  { %v773_v61 = vpop.f32.mrb[96].mxu0 }
 0x1d5   :  { %v774_v62 = vadd.f32 %v3503_v16, %v773_v61  ;;  %v775_v63 = vpop.f32.mrb[97].mxu0  ;;  %2708 = vmatmul.mubr.bf16.gmra.mrb[44].mxu1 %v923_v60 }
 0x1d6   :  { %v776_v0 = vpop.f32.mrb[98].mxu0 }
 0x1d7   :  { %v777_v1 = vadd.f32 %v3503_v16, %v776_v0  ;;  %v778_v2 = vpop.f32.mrb[99].mxu0  ;;  %v884_v3 = vmax.f32 %v774_v62, 0.0 }
 0x1d9   :  { %v885_v4 = vmax.f32 %v777_v1, 0.0 }
 0x1db   :  { %v924_v5 = vpack.c.bf16 %v885_v4, %v884_v3 }
 0x1dc   :  { %v781_v6 = vpop.f32.mrb[100].mxu0 }
 0x1dd   :  { %v782_v7 = vadd.f32 %v3503_v16, %v781_v6  ;;  %v783_v8 = vpop.f32.mrb[101].mxu0  ;;  %2711 = vmatprep.mubr.bf16.mxu1 %v924_v5 }
 0x1de   :  { %v784_v9 = vpop.f32.mrb[102].mxu0 }
 0x1df   :  { %v785_v10 = vadd.f32 %v3503_v16, %v784_v9  ;;  %v786_v11 = vpop.f32.mrb[103].mxu0  ;;  %v886_v12 = vmax.f32 %v782_v7, 0.0 }
 0x1e1   :  { %v887_v13 = vmax.f32 %v785_v10, 0.0 }
 0x1e3   :  { %v925_v14 = vpack.c.bf16 %v887_v13, %v886_v12 }
 0x1e4   :  { %v789_v15 = vpop.f32.mrb[104].mxu0 }
 0x1e5   :  { %v790_v17 = vadd.f32 %v3503_v16, %v789_v15  ;;  %v791_v18 = vpop.f32.mrb[105].mxu0  ;;  %2712 = vmatmul.mubr.bf16.gmra.mrb[48].mxu1 %v925_v14 }
 0x1e6   :  { %v792_v19 = vpop.f32.mrb[106].mxu0 }
 0x1e7   :  { %v793_v20 = vadd.f32 %v3503_v16, %v792_v19  ;;  %v794_v21 = vpop.f32.mrb[107].mxu0  ;;  %v888_v22 = vmax.f32 %v790_v17, 0.0 }
 0x1e9   :  { %v889_v23 = vmax.f32 %v793_v20, 0.0 }
 0x1eb   :  { %v926_v24 = vpack.c.bf16 %v889_v23, %v888_v22 }
 0x1ec   :  { %v797_v25 = vpop.f32.mrb[108].mxu0 }
 0x1ed   :  { %v798_v26 = vadd.f32 %v3503_v16, %v797_v25  ;;  %v799_v27 = vpop.f32.mrb[109].mxu0  ;;  %2715 = vmatprep.mubr.bf16.mxu1 %v926_v24 }
 0x1ee   :  { %v800_v28 = vpop.f32.mrb[110].mxu0 }
 0x1ef   :  { %v801_v29 = vadd.f32 %v3503_v16, %v800_v28  ;;  %v802_v30 = vpop.f32.mrb[111].mxu0  ;;  %v890_v31 = vmax.f32 %v798_v26, 0.0 }
 0x1f1   :  { %v891_v32 = vmax.f32 %v801_v29, 0.0 }
 0x1f3   :  { %v927_v33 = vpack.c.bf16 %v891_v32, %v890_v31 }
 0x1f4   :  { %v805_v34 = vpop.f32.mrb[112].mxu0 }
 0x1f5   :  { %v806_v35 = vadd.f32 %v3503_v16, %v805_v34  ;;  %v807_v36 = vpop.f32.mrb[113].mxu0  ;;  %2716 = vmatmul.mubr.bf16.gmra.mrb[52].mxu1 %v927_v33 }
 0x1f6   :  { %v808_v37 = vpop.f32.mrb[114].mxu0 }
 0x1f7   :  { %v809_v39 = vadd.f32 %v3503_v16, %v808_v37  ;;  %v810_v40 = vpop.f32.mrb[115].mxu0  ;;  %v892_v42 = vmax.f32 %v806_v35, 0.0 }
 0x1f8   :  { %v2665_v41 = vpop.f32.mrb[0].mxu1 }
 0x1f9   :  { %v893_v43 = vmax.f32 %v809_v39, 0.0  ;;  %v1046_v44 = vadd.f32 %v2665_v41, %v3616_v38  ;;  %v1037_v45 = vpop.f32.mrb[1].mxu1 }
 0x1fa   :  { %v1038_v46 = vadd.f32 %v3616_v38, %v1037_v45  ;;  %v2666_v47 = vpop.f32.mrb[2].mxu1 }
 0x1fb   :  { %v928_v48 = vpack.c.bf16 %v893_v43, %v892_v42  ;;  %v1049_v49 = vadd.f32 %v2666_v47, %v3616_v38  ;;  %v1040_v50 = vpop.f32.mrb[3].mxu1  ;;  %v1294_v53 = vmax.f32 %v1046_v44, 0.0 }
 0x1fc   :  { %v1041_v51 = vadd.f32 %v3616_v38, %v1040_v50  ;;  %v813_v52 = vpop.f32.mrb[116].mxu0  ;;  %v1292_v57 = vmax.f32 %v1038_v46, 0.0 }
 0x1fd   :  { %v1295_v54 = vmax.f32 %v1049_v49, 0.0  ;;  %v814_v55 = vadd.f32 %v3503_v16, %v813_v52  ;;  %v815_v56 = vpop.f32.mrb[117].mxu0  ;;  %2719 = vmatprep.mubr.bf16.mxu1 %v928_v48 }
 0x1fe   :  { %v1293_v58 = vmax.f32 %v1041_v51, 0.0  ;;  %v816_v59 = vpop.f32.mrb[118].mxu0 }
 0x1ff   :  { %v1357_v60 = vpack.c.bf16 %v1295_v54, %v1294_v53  ;;  %v817_v61 = vadd.f32 %v3503_v16, %v816_v59  ;;  %v818_v62 = vpop.f32.mrb[119].mxu0  ;;  %v894_v0 = vmax.f32 %v814_v55, 0.0 }
 0x200   :  { %v1356_v63 = vpack.c.bf16 %v1293_v58, %v1292_v57 }
 0x201   :  { %v895_v1 = vmax.f32 %v817_v61, 0.0 }
 0x203   :  { %v929_v2 = vpack.c.bf16 %v895_v1, %v894_v0 }
 0x204   :  { %v821_v3 = vpop.f32.mrb[120].mxu0 }
 0x205   :  { %v822_v4 = vadd.f32 %v3503_v16, %v821_v3  ;;  %v823_v5 = vpop.f32.mrb[121].mxu0  ;;  %2720 = vmatmul.mubr.bf16.gmra.mrb[56].mxu1 %v929_v2 }
 0x206   :  { %v824_v6 = vpop.f32.mrb[122].mxu0 }
 0x207   :  { %v825_v7 = vadd.f32 %v3503_v16, %v824_v6  ;;  %v826_v8 = vpop.f32.mrb[123].mxu0  ;;  %v896_v10 = vmax.f32 %v822_v4, 0.0 }
 0x208   :  { %v2669_v9 = vpop.f32.mrb[4].mxu1 }
 0x209   :  { %v897_v11 = vmax.f32 %v825_v7, 0.0  ;;  %v1062_v12 = vadd.f32 %v2669_v9, %v3616_v38  ;;  %v1053_v13 = vpop.f32.mrb[5].mxu1 }
 0x20a   :  { %v1054_v14 = vadd.f32 %v3616_v38, %v1053_v13  ;;  %v2670_v15 = vpop.f32.mrb[6].mxu1 }
 0x20b   :  { %v930_v17 = vpack.c.bf16 %v897_v11, %v896_v10  ;;  %v1065_v18 = vadd.f32 %v2670_v15, %v3616_v38  ;;  %v1056_v19 = vpop.f32.mrb[7].mxu1  ;;  %v1298_v22 = vmax.f32 %v1062_v12, 0.0 }
 0x20c   :  { %v1057_v20 = vadd.f32 %v3616_v38, %v1056_v19  ;;  %v829_v21 = vpop.f32.mrb[124].mxu0  ;;  %v1296_v26 = vmax.f32 %v1054_v14, 0.0 }
 0x20d   :  { %v1299_v23 = vmax.f32 %v1065_v18, 0.0  ;;  %v830_v24 = vadd.f32 %v3503_v16, %v829_v21  ;;  %v831_v25 = vpop.f32.mrb[125].mxu0  ;;  %2723 = vmatprep.mubr.bf16.mxu1 %v930_v17 }
 0x20e   :  { %v1297_v27 = vmax.f32 %v1057_v20, 0.0  ;;  %v832_v28 = vpop.f32.mrb[126].mxu0 }
 0x20f   :  { %v1359_v29 = vpack.c.bf16 %v1299_v23, %v1298_v22  ;;  %v833_v30 = vadd.f32 %v3503_v16, %v832_v28  ;;  %v834_v31 = vpop.f32.mrb[127].mxu0  ;;  %v898_v33 = vmax.f32 %v830_v24, 0.0 }
 0x210   :  { %v1358_v32 = vpack.c.bf16 %v1297_v27, %v1296_v26 }
 0x211   :  { %v899_v34 = vmax.f32 %v833_v30, 0.0 }
 0x213   :  { %v931_v35 = vpack.c.bf16 %v899_v34, %v898_v33 }
 0x215   :  { %2724 = vmatmul.mubr.bf16.gmra.mrb[60].mxu1 %v931_v35 }
 0x216   :  { %2743 = vmatprep.mubr.bf16.mxu1 %v1356_v63 }
 0x218   :  { %v2673_v36 = vpop.f32.mrb[8].mxu1 }
 0x219   :  { %v1078_v37 = vadd.f32 %v2673_v36, %v3616_v38  ;;  %v1069_v39 = vpop.f32.mrb[9].mxu1 }
 0x21a   :  { %v1070_v40 = vadd.f32 %v3616_v38, %v1069_v39  ;;  %v2674_v41 = vpop.f32.mrb[10].mxu1 }
 0x21b   :  { %v1081_v42 = vadd.f32 %v2674_v41, %v3616_v38  ;;  %v1072_v43 = vpop.f32.mrb[11].mxu1  ;;  %v1302_v16 = vmax.f32 %v1078_v37, 0.0 }
 0x21c   :  { %v1073_v44 = vadd.f32 %v3616_v38, %v1072_v43  ;;  %v1300_v46 = vmax.f32 %v1070_v40, 0.0 }
 0x21d   :  { %v1303_v45 = vmax.f32 %v1081_v42, 0.0  ;;  %2744 = vmatmul.mubr.bf16.vlgmr.msra.gmra.mrb[64].mxu1 %v1357_v60 }
 0x21e   :  { %v1301_v47 = vmax.f32 %v1073_v44, 0.0  ;;  %2747 = vmatprep.mubr.bf16.mxu1 %v1358_v32 }
 0x21f   :  { %v1361_v48 = vpack.c.bf16 %v1303_v45, %v1302_v16 }
 0x220   :  { %v1360_v49 = vpack.c.bf16 %v1301_v47, %v1300_v46 }
 0x225   :  { %2748 = vmatmul.mubr.bf16.gmra.mrb[68].mxu1 %v1359_v29 }
 0x226   :  { %2751 = vmatprep.mubr.bf16.mxu1 %v1360_v49 }
 0x228   :  { %v2677_v50 = vpop.f32.mrb[12].mxu1 }
 0x229   :  { %v1094_v51 = vadd.f32 %v2677_v50, %v3616_v38  ;;  %v1085_v52 = vpop.f32.mrb[13].mxu1 }
 0x22a   :  { %v1086_v53 = vadd.f32 %v3616_v38, %v1085_v52  ;;  %v2678_v54 = vpop.f32.mrb[14].mxu1 }
 0x22b   :  { %v1097_v55 = vadd.f32 %v2678_v54, %v3616_v38  ;;  %v1088_v56 = vpop.f32.mrb[15].mxu1  ;;  %v1306_v58 = vmax.f32 %v1094_v51, 0.0 }
 0x22c   :  { %v1089_v57 = vadd.f32 %v3616_v38, %v1088_v56  ;;  %v1304_v60 = vmax.f32 %v1086_v53, 0.0 }
 0x22d   :  { %v1307_v59 = vmax.f32 %v1097_v55, 0.0  ;;  %2752 = vmatmul.mubr.bf16.gmra.mrb[72].mxu1 %v1361_v48 }
 0x22e   :  { %v1305_v61 = vmax.f32 %v1089_v57, 0.0 }
 0x22f   :  { %v1363_v62 = vpack.c.bf16 %v1307_v59, %v1306_v58 }
 0x230   :  { %v1362_v63 = vpack.c.bf16 %v1305_v61, %v1304_v60 }
 0x232   :  { %2755 = vmatprep.mubr.bf16.mxu1 %v1362_v63 }
 0x235   :  { %2756 = vmatmul.mubr.bf16.gmra.mrb[76].mxu1 %v1363_v62 }
 0x238   :  { %v2681_v0 = vpop.f32.mrb[16].mxu1 }
 0x239   :  { %v1110_v1 = vadd.f32 %v2681_v0, %v3616_v38  ;;  %v1101_v2 = vpop.f32.mrb[17].mxu1 }
 0x23a   :  { %v1102_v3 = vadd.f32 %v3616_v38, %v1101_v2  ;;  %v2682_v4 = vpop.f32.mrb[18].mxu1 }
 0x23b   :  { %v1113_v5 = vadd.f32 %v2682_v4, %v3616_v38  ;;  %v1104_v6 = vpop.f32.mrb[19].mxu1  ;;  %v1310_v8 = vmax.f32 %v1110_v1, 0.0 }
 0x23c   :  { %v1105_v7 = vadd.f32 %v3616_v38, %v1104_v6  ;;  %v1308_v10 = vmax.f32 %v1102_v3, 0.0 }
 0x23d   :  { %v1311_v9 = vmax.f32 %v1113_v5, 0.0 }
 0x23e   :  { %v1309_v11 = vmax.f32 %v1105_v7, 0.0 }
 0x23f   :  { %v1365_v12 = vpack.c.bf16 %v1311_v9, %v1310_v8 }
 0x240   :  { %v1364_v13 = vpack.c.bf16 %v1309_v11, %v1308_v10 }
 0x242   :  { %2759 = vmatprep.mubr.bf16.mxu1 %v1364_v13 }
 0x243   :  { %2760 = vmatmul.mubr.bf16.gmra.mrb[80].mxu1 %v1365_v12 }
 0x248   :  { %v2685_v14 = vpop.f32.mrb[20].mxu1 }
 0x249   :  { %v1126_v15 = vadd.f32 %v2685_v14, %v3616_v38  ;;  %v1117_v17 = vpop.f32.mrb[21].mxu1 }
 0x24a   :  { %v1118_v18 = vadd.f32 %v3616_v38, %v1117_v17  ;;  %v2686_v19 = vpop.f32.mrb[22].mxu1 }
 0x24b   :  { %v1129_v20 = vadd.f32 %v2686_v19, %v3616_v38  ;;  %v1120_v21 = vpop.f32.mrb[23].mxu1  ;;  %v1314_v23 = vmax.f32 %v1126_v15, 0.0 }
 0x24c   :  { %v1121_v22 = vadd.f32 %v3616_v38, %v1120_v21  ;;  %v1312_v25 = vmax.f32 %v1118_v18, 0.0 }
 0x24d   :  { %v1315_v24 = vmax.f32 %v1129_v20, 0.0 }
 0x24e   :  { %v1313_v26 = vmax.f32 %v1121_v22, 0.0 }
 0x24f   :  { %v1367_v27 = vpack.c.bf16 %v1315_v24, %v1314_v23 }
 0x250   :  { %v1366_v28 = vpack.c.bf16 %v1313_v26, %v1312_v25 }
 0x252   :  { %2763 = vmatprep.mubr.bf16.mxu1 %v1366_v28 }
 0x253   :  { %2764 = vmatmul.mubr.bf16.gmra.mrb[84].mxu1 %v1367_v27 }
 0x258   :  { %v2689_v29 = vpop.f32.mrb[24].mxu1 }
 0x259   :  { %v1142_v30 = vadd.f32 %v2689_v29, %v3616_v38  ;;  %v1133_v31 = vpop.f32.mrb[25].mxu1 }
 0x25a   :  { %v1134_v32 = vadd.f32 %v3616_v38, %v1133_v31  ;;  %v2690_v33 = vpop.f32.mrb[26].mxu1 }
 0x25b   :  { %v1145_v34 = vadd.f32 %v2690_v33, %v3616_v38  ;;  %v1136_v35 = vpop.f32.mrb[27].mxu1  ;;  %v1318_v37 = vmax.f32 %v1142_v30, 0.0 }
 0x25c   :  { %v1137_v36 = vadd.f32 %v3616_v38, %v1136_v35  ;;  %v1316_v40 = vmax.f32 %v1134_v32, 0.0 }
 0x25d   :  { %v1319_v39 = vmax.f32 %v1145_v34, 0.0 }
 0x25e   :  { %v1317_v41 = vmax.f32 %v1137_v36, 0.0 }
 0x25f   :  { %v1369_v42 = vpack.c.bf16 %v1319_v39, %v1318_v37 }
 0x260   :  { %v1368_v43 = vpack.c.bf16 %v1317_v41, %v1316_v40 }
 0x262   :  { %2767 = vmatprep.mubr.bf16.mxu1 %v1368_v43 }
 0x263   :  { %2768 = vmatmul.mubr.bf16.gmra.mrb[88].mxu1 %v1369_v42 }
 0x268   :  { %v2693_v44 = vpop.f32.mrb[28].mxu1 }
 0x269   :  { %v1158_v16 = vadd.f32 %v2693_v44, %v3616_v38  ;;  %v1149_v45 = vpop.f32.mrb[29].mxu1 }
 0x26a   :  { %v1150_v46 = vadd.f32 %v3616_v38, %v1149_v45  ;;  %v2694_v47 = vpop.f32.mrb[30].mxu1 }
 0x26b   :  { %v1161_v48 = vadd.f32 %v2694_v47, %v3616_v38  ;;  %v1152_v49 = vpop.f32.mrb[31].mxu1  ;;  %v1322_v51 = vmax.f32 %v1158_v16, 0.0 }
 0x26c   :  { %v1153_v50 = vadd.f32 %v3616_v38, %v1152_v49  ;;  %v1320_v53 = vmax.f32 %v1150_v46, 0.0 }
 0x26d   :  { %v1323_v52 = vmax.f32 %v1161_v48, 0.0 }
 0x26e   :  { %v1321_v54 = vmax.f32 %v1153_v50, 0.0 }
 0x26f   :  { %v1371_v55 = vpack.c.bf16 %v1323_v52, %v1322_v51 }
 0x270   :  { %v1370_v56 = vpack.c.bf16 %v1321_v54, %v1320_v53 }
 0x272   :  { %2771 = vmatprep.mubr.bf16.mxu1 %v1370_v56 }
 0x273   :  { %2772 = vmatmul.mubr.bf16.gmra.mrb[92].mxu1 %v1371_v55 }
 0x278   :  { %v2697_v57 = vpop.f32.mrb[32].mxu1 }
 0x279   :  { %v1174_v58 = vadd.f32 %v2697_v57, %v3616_v38  ;;  %v1165_v59 = vpop.f32.mrb[33].mxu1 }
 0x27a   :  { %v1166_v60 = vadd.f32 %v3616_v38, %v1165_v59  ;;  %v2698_v61 = vpop.f32.mrb[34].mxu1 }
 0x27b   :  { %v1177_v62 = vadd.f32 %v2698_v61, %v3616_v38  ;;  %v1168_v63 = vpop.f32.mrb[35].mxu1  ;;  %v1326_v1 = vmax.f32 %v1174_v58, 0.0 }
 0x27c   :  { %v1169_v0 = vadd.f32 %v3616_v38, %v1168_v63  ;;  %v1324_v3 = vmax.f32 %v1166_v60, 0.0 }
 0x27d   :  { %v1327_v2 = vmax.f32 %v1177_v62, 0.0 }
 0x27e   :  { %v1325_v4 = vmax.f32 %v1169_v0, 0.0 }
 0x27f   :  { %v1373_v5 = vpack.c.bf16 %v1327_v2, %v1326_v1 }
 0x280   :  { %v1372_v6 = vpack.c.bf16 %v1325_v4, %v1324_v3 }
 0x282   :  { %2775 = vmatprep.mubr.bf16.mxu1 %v1372_v6 }
 0x283   :  { %2776 = vmatmul.mubr.bf16.gmra.mrb[96].mxu1 %v1373_v5 }
 0x288   :  { %v2701_v7 = vpop.f32.mrb[36].mxu1 }
 0x289   :  { %v1190_v8 = vadd.f32 %v2701_v7, %v3616_v38  ;;  %v1181_v9 = vpop.f32.mrb[37].mxu1 }
 0x28a   :  { %v1182_v10 = vadd.f32 %v3616_v38, %v1181_v9  ;;  %v2702_v11 = vpop.f32.mrb[38].mxu1 }
 0x28b   :  { %v1193_v12 = vadd.f32 %v2702_v11, %v3616_v38  ;;  %v1184_v13 = vpop.f32.mrb[39].mxu1  ;;  %v1330_v15 = vmax.f32 %v1190_v8, 0.0 }
 0x28c   :  { %v1185_v14 = vadd.f32 %v3616_v38, %v1184_v13  ;;  %v1328_v18 = vmax.f32 %v1182_v10, 0.0 }
 0x28d   :  { %v1331_v17 = vmax.f32 %v1193_v12, 0.0 }
 0x28e   :  { %v1329_v19 = vmax.f32 %v1185_v14, 0.0 }
 0x28f   :  { %v1375_v20 = vpack.c.bf16 %v1331_v17, %v1330_v15 }
 0x290   :  { %v1374_v21 = vpack.c.bf16 %v1329_v19, %v1328_v18 }
 0x292   :  { %2779 = vmatprep.mubr.bf16.mxu1 %v1374_v21 }
 0x293   :  { %2780 = vmatmul.mubr.bf16.gmra.mrb[100].mxu1 %v1375_v20 }
 0x298   :  { %v2705_v22 = vpop.f32.mrb[40].mxu1 }
 0x299   :  { %v1206_v23 = vadd.f32 %v2705_v22, %v3616_v38  ;;  %v1197_v24 = vpop.f32.mrb[41].mxu1 }
 0x29a   :  { %v1198_v25 = vadd.f32 %v3616_v38, %v1197_v24  ;;  %v2706_v26 = vpop.f32.mrb[42].mxu1 }
 0x29b   :  { %v1209_v27 = vadd.f32 %v2706_v26, %v3616_v38  ;;  %v1200_v28 = vpop.f32.mrb[43].mxu1  ;;  %v1334_v30 = vmax.f32 %v1206_v23, 0.0 }
 0x29c   :  { %v1201_v29 = vadd.f32 %v3616_v38, %v1200_v28  ;;  %v1332_v32 = vmax.f32 %v1198_v25, 0.0 }
 0x29d   :  { %v1335_v31 = vmax.f32 %v1209_v27, 0.0 }
 0x29e   :  { %v1333_v33 = vmax.f32 %v1201_v29, 0.0 }
 0x29f   :  { %v1377_v34 = vpack.c.bf16 %v1335_v31, %v1334_v30 }
 0x2a0   :  { %v1376_v35 = vpack.c.bf16 %v1333_v33, %v1332_v32 }
 0x2a2   :  { %2783 = vmatprep.mubr.bf16.mxu1 %v1376_v35 }
 0x2a3   :  { %2784 = vmatmul.mubr.bf16.gmra.mrb[104].mxu1 %v1377_v34 }
 0x2a8   :  { %v2709_v36 = vpop.f32.mrb[44].mxu1 }
 0x2a9   :  { %v1222_v37 = vadd.f32 %v2709_v36, %v3616_v38  ;;  %v1213_v39 = vpop.f32.mrb[45].mxu1 }
 0x2aa   :  { %v1214_v40 = vadd.f32 %v3616_v38, %v1213_v39  ;;  %v2710_v41 = vpop.f32.mrb[46].mxu1 }
 0x2ab   :  { %v1225_v42 = vadd.f32 %v2710_v41, %v3616_v38  ;;  %v1216_v43 = vpop.f32.mrb[47].mxu1  ;;  %v1338_v16 = vmax.f32 %v1222_v37, 0.0 }
 0x2ac   :  { %v1217_v44 = vadd.f32 %v3616_v38, %v1216_v43  ;;  %v1336_v46 = vmax.f32 %v1214_v40, 0.0 }
 0x2ad   :  { %v1339_v45 = vmax.f32 %v1225_v42, 0.0  ;;  %v3692_v42 = vld [vmem:[%s4288_s6] ss:$0 sm:$0xff]  ;;  %s3220_s6 = smov [#allocation2]  }
 0x2ae   :  { %v1337_v47 = vmax.f32 %v1217_v44, 0.0  ;;  %s2457_s22 = sshll.u32 %s3220_s6, 4  ;;  %s2458_s22 = int_to_ptr.vmem [resolvable:$true] %s2457_s22 }
 0x2af   :  { %v1379_v48 = vpack.c.bf16 %v1339_v45, %v1338_v16  ;;  %s3195_s23 = scalar_lea.vmem %s2458_s22, 8192  ;;  %p3200_p1 = scmp.lt.s32.totalorder %s2458_s22, %s2458_s22 }
 0x2b0   :  { %v1378_v49 = vpack.c.bf16 %v1337_v47, %v1336_v46  ;;  %p3196_p0 = scmp.ne.s32.totalorder %s2458_s22, %s3195_s23  ;;  %p3201_p2 = scmp.lt.s32.totalorder %s3195_s23, %s3195_s23 }
 0x2b2   :  { %2787 = vmatprep.mubr.bf16.mxu1 %v1378_v49  ;;  %p3202_p3 = por %p3201_p2, %p3200_p1 }
 0x2b3   :  { %2788 = vmatmul.mubr.bf16.gmra.mrb[108].mxu1 %v1379_v48 }
 0x2b4   :  { %p3203_p4 = pnand %p3202_p3, %p3196_p0 }
 0x2b8   :  { %v2713_v50 = vpop.f32.mrb[48].mxu1 }
 0x2b9   :  { %v1238_v51 = vadd.f32 %v2713_v50, %v3616_v38  ;;  %v1229_v52 = vpop.f32.mrb[49].mxu1 }
 0x2ba   :  { %v1230_v53 = vadd.f32 %v3616_v38, %v1229_v52  ;;  %v2714_v54 = vpop.f32.mrb[50].mxu1 }
 0x2bb   :  { %v1241_v55 = vadd.f32 %v2714_v54, %v3616_v38  ;;  %v1232_v56 = vpop.f32.mrb[51].mxu1  ;;  %v1342_v58 = vmax.f32 %v1238_v51, 0.0 }
 0x2bc   :  { %v1233_v57 = vadd.f32 %v3616_v38, %v1232_v56  ;;  %v1340_v60 = vmax.f32 %v1230_v53, 0.0 }
 0x2bd   :  { %v1343_v59 = vmax.f32 %v1241_v55, 0.0 }
 0x2be   :  { %v1341_v61 = vmax.f32 %v1233_v57, 0.0 }
 0x2bf   :  { %v1381_v62 = vpack.c.bf16 %v1343_v59, %v1342_v58 }
 0x2c0   :  { %v1380_v63 = vpack.c.bf16 %v1341_v61, %v1340_v60 }
 0x2c2   :  { %2791 = vmatprep.mubr.bf16.mxu1 %v1380_v63 }
 0x2c3   :  { %2792 = vmatmul.mubr.bf16.gmra.mrb[112].mxu1 %v1381_v62 }
 0x2c8   :  { %v2717_v0 = vpop.f32.mrb[52].mxu1 }
 0x2c9   :  { %v1254_v1 = vadd.f32 %v2717_v0, %v3616_v38  ;;  %v1245_v2 = vpop.f32.mrb[53].mxu1 }
 0x2ca   :  { %v1246_v3 = vadd.f32 %v3616_v38, %v1245_v2  ;;  %v2718_v4 = vpop.f32.mrb[54].mxu1 }
 0x2cb   :  { %v1257_v5 = vadd.f32 %v2718_v4, %v3616_v38  ;;  %v1248_v6 = vpop.f32.mrb[55].mxu1  ;;  %v1346_v8 = vmax.f32 %v1254_v1, 0.0 }
 0x2cc   :  { %v1249_v7 = vadd.f32 %v3616_v38, %v1248_v6  ;;  %v1344_v10 = vmax.f32 %v1246_v3, 0.0 }
 0x2cd   :  { %v1347_v9 = vmax.f32 %v1257_v5, 0.0 }
 0x2ce   :  { %v1345_v11 = vmax.f32 %v1249_v7, 0.0 }
 0x2cf   :  { %v1383_v12 = vpack.c.bf16 %v1347_v9, %v1346_v8 }
 0x2d0   :  { %v1382_v13 = vpack.c.bf16 %v1345_v11, %v1344_v10 }
 0x2d2   :  { %2795 = vmatprep.mubr.bf16.mxu1 %v1382_v13 }
 0x2d3   :  { %2796 = vmatmul.mubr.bf16.gmra.mrb[116].mxu1 %v1383_v12 }
 0x2d8   :  { %v2721_v14 = vpop.f32.mrb[56].mxu1 }
 0x2d9   :  { %v1270_v15 = vadd.f32 %v2721_v14, %v3616_v38  ;;  %v1261_v17 = vpop.f32.mrb[57].mxu1 }
 0x2da   :  { %v1262_v18 = vadd.f32 %v3616_v38, %v1261_v17  ;;  %v2722_v19 = vpop.f32.mrb[58].mxu1 }
 0x2db   :  { %v1273_v20 = vadd.f32 %v2722_v19, %v3616_v38  ;;  %v1264_v21 = vpop.f32.mrb[59].mxu1  ;;  %v1350_v23 = vmax.f32 %v1270_v15, 0.0 }
 0x2dc   :  { %v1265_v22 = vadd.f32 %v3616_v38, %v1264_v21  ;;  %v1348_v25 = vmax.f32 %v1262_v18, 0.0 }
 0x2dd   :  { %v1351_v24 = vmax.f32 %v1273_v20, 0.0 }
 0x2de   :  { %v1349_v26 = vmax.f32 %v1265_v22, 0.0 }
 0x2df   :  { %v1385_v27 = vpack.c.bf16 %v1351_v24, %v1350_v23 }
 0x2e0   :  { %v1384_v28 = vpack.c.bf16 %v1349_v26, %v1348_v25 }
 0x2e2   :  { %2799 = vmatprep.mubr.bf16.mxu1 %v1384_v28 }
 0x2e3   :  { %2800 = vmatmul.mubr.bf16.gmra.mrb[120].mxu1 %v1385_v27 }
 0x2e8   :  { %v2725_v29 = vpop.f32.mrb[60].mxu1 }
 0x2e9   :  { %v1286_v30 = vadd.f32 %v2725_v29, %v3616_v38  ;;  %v1277_v31 = vpop.f32.mrb[61].mxu1 }
 0x2ea   :  { %v1278_v32 = vadd.f32 %v3616_v38, %v1277_v31  ;;  %v2726_v33 = vpop.f32.mrb[62].mxu1 }
 0x2eb   :  { %v1289_v34 = vadd.f32 %v2726_v33, %v3616_v38  ;;  %v1280_v35 = vpop.f32.mrb[63].mxu1  ;;  %v1354_v37 = vmax.f32 %v1286_v30, 0.0 }
 0x2ec   :  { %v1281_v36 = vadd.f32 %v3616_v38, %v1280_v35  ;;  %v1352_v40 = vmax.f32 %v1278_v32, 0.0 }
 0x2ed   :  { %v1355_v39 = vmax.f32 %v1289_v34, 0.0 }
 0x2ee   :  { %v1353_v41 = vmax.f32 %v1281_v36, 0.0 }
 0x2ef   :  { %v1387_v43 = vpack.c.bf16 %v1355_v39, %v1354_v37 }
 0x2f0   :  { %v1386_v44 = vpack.c.bf16 %v1353_v41, %v1352_v40  ;;  %v2745_v16 = vpop.f32.mrb[64].mxu1 }
 0x2f1   :  { %v3695_v45 = vadd.f32 %v2745_v16, %v3692_v42  ;;  %v1493_v46 = vpop.f32.mrb[65].mxu1 }
 0x2f2   :  { %v3698_v47 = vadd.f32 %v3692_v42, %v1493_v46  ;;  %v2746_v38 = vpop.f32.mrb[66].mxu1  ;;  %2803 = vmatprep.mubr.bf16.mxu1 %v1386_v44 }
 0x2f3   :  { %2804 = vmatmul.mubr.bf16.gmra.mrb[124].mxu1 %v1387_v43  ;;  %1752 = vmax.xlane.f32.xlu1 %v3695_v45  ;;  %v1496_v48 = vpop.f32.mrb[67].mxu1  ;;  %v3703_v49 = vadd.f32 %v2746_v38, %v3692_v42 }
 0x2f4   :  { %1748 = vmax.xlane.f32.xlu0 %v3698_v47  ;;  %v3706_v50 = vadd.f32 %v3692_v42, %v1496_v48 }
 0x2f7   :  { %1754 = vmax.xlane.f32.xlu1 %v3703_v49 }
 0x2f8   :  { %v2749_v51 = vpop.f32.mrb[68].mxu1  ;;  %1750 = vmax.xlane.f32.xlu0 %v3706_v50 }
 0x2f9   :  { %v3711_v52 = vadd.f32 %v2749_v51, %v3692_v42  ;;  %v1509_v53 = vpop.f32.mrb[69].mxu1 }
 0x2fa   :  { %v2750_v54 = vpop.f32.mrb[70].mxu1  ;;  %v3719_v57 = vadd.f32 %v3692_v42, %v1509_v53 }
 0x2fb   :  { %v3714_v55 = vadd.f32 %v2750_v54, %v3692_v42  ;;  %v1512_v56 = vpop.f32.mrb[71].mxu1 }
 0x2fc   :  { %1760 = vmax.xlane.f32.xlu0 %v3711_v52  ;;  %v3722_v58 = vadd.f32 %v3692_v42, %v1512_v56 }
 0x2fd   :  { %1762 = vmax.xlane.f32.xlu1 %v3714_v55 }
 0x300   :  { %v2753_v59 = vpop.f32.mrb[72].mxu1  ;;  %1756 = vmax.xlane.f32.xlu0 %v3719_v57 }
 0x301   :  { %v3726_v60 = vadd.f32 %v2753_v59, %v3692_v42  ;;  %v1525_v61 = vpop.f32.mrb[73].mxu1  ;;  %1758 = vmax.xlane.f32.xlu1 %v3722_v58 }
 0x302   :  { %v2754_v62 = vpop.f32.mrb[74].mxu1  ;;  %v3735_v1 = vadd.f32 %v3692_v42, %v1525_v61 }
 0x303   :  { %v3730_v63 = vadd.f32 %v2754_v62, %v3692_v42  ;;  %v1528_v0 = vpop.f32.mrb[75].mxu1 }
 0x304   :  { %1768 = vmax.xlane.f32.xlu0 %v3726_v60  ;;  %v3738_v2 = vadd.f32 %v3692_v42, %v1528_v0 }
 0x305   :  { %1770 = vmax.xlane.f32.xlu1 %v3730_v63 }
 0x308   :  { %v2757_v3 = vpop.f32.mrb[76].mxu1  ;;  %1764 = vmax.xlane.f32.xlu0 %v3735_v1 }
 0x309   :  { %v3742_v4 = vadd.f32 %v2757_v3, %v3692_v42  ;;  %v1541_v5 = vpop.f32.mrb[77].mxu1  ;;  %1766 = vmax.xlane.f32.xlu1 %v3738_v2 }
 0x30a   :  { %v2758_v6 = vpop.f32.mrb[78].mxu1  ;;  %v3751_v9 = vadd.f32 %v3692_v42, %v1541_v5 }
 0x30b   :  { %v3746_v7 = vadd.f32 %v2758_v6, %v3692_v42  ;;  %v1544_v8 = vpop.f32.mrb[79].mxu1 }
 0x30c   :  { %1776 = vmax.xlane.f32.xlu0 %v3742_v4  ;;  %v3754_v10 = vadd.f32 %v3692_v42, %v1544_v8 }
 0x30d   :  { %1778 = vmax.xlane.f32.xlu1 %v3746_v7 }
 0x310   :  { %1772 = vmax.xlane.f32.xlu0 %v3751_v9 }
 0x311   :  { %1774 = vmax.xlane.f32.xlu1 %v3754_v10 }
 0x316   :  { %v2761_v11 = vpop.f32.mrb[80].mxu1 }
 0x317   :  { %v3759_v12 = vadd.f32 %v2761_v11, %v3692_v42  ;;  %v1557_v13 = vpop.f32.mrb[81].mxu1 }
 0x318   :  { %v2762_v14 = vpop.f32.mrb[82].mxu1  ;;  %v3766_v18 = vadd.f32 %v3692_v42, %v1557_v13 }
 0x319   :  { %v3762_v15 = vadd.f32 %v2762_v14, %v3692_v42  ;;  %v1560_v17 = vpop.f32.mrb[83].mxu1  ;;  %1784 = vmax.xlane.f32.xlu0 %v3759_v12 }
 0x31a   :  { %v3770_v19 = vadd.f32 %v3692_v42, %v1560_v17 }
 0x31b   :  { %1786 = vmax.xlane.f32.xlu1 %v3762_v15 }
 0x31d   :  { %1780 = vmax.xlane.f32.xlu0 %v3766_v18 }
 0x31f   :  { %1782 = vmax.xlane.f32.xlu1 %v3770_v19 }
 0x326   :  { %v2765_v20 = vpop.f32.mrb[84].mxu1 }
 0x327   :  { %v3775_v21 = vadd.f32 %v2765_v20, %v3692_v42  ;;  %v1573_v22 = vpop.f32.mrb[85].mxu1 }
 0x328   :  { %v2766_v23 = vpop.f32.mrb[86].mxu1  ;;  %v3782_v26 = vadd.f32 %v3692_v42, %v1573_v22 }
 0x329   :  { %v3778_v24 = vadd.f32 %v2766_v23, %v3692_v42  ;;  %v1576_v25 = vpop.f32.mrb[87].mxu1  ;;  %1792 = vmax.xlane.f32.xlu0 %v3775_v21 }
 0x32a   :  { %v3786_v27 = vadd.f32 %v3692_v42, %v1576_v25 }
 0x32b   :  { %1794 = vmax.xlane.f32.xlu1 %v3778_v24 }
 0x32d   :  { %1788 = vmax.xlane.f32.xlu0 %v3782_v26 }
 0x32f   :  { %1790 = vmax.xlane.f32.xlu1 %v3786_v27 }
 0x336   :  { %v2769_v28 = vpop.f32.mrb[88].mxu1 }
 0x337   :  { %v3791_v29 = vadd.f32 %v2769_v28, %v3692_v42  ;;  %v1589_v30 = vpop.f32.mrb[89].mxu1 }
 0x338   :  { %v2770_v31 = vpop.f32.mrb[90].mxu1  ;;  %v3798_v34 = vadd.f32 %v3692_v42, %v1589_v30 }
 0x339   :  { %v3794_v32 = vadd.f32 %v2770_v31, %v3692_v42  ;;  %v1592_v33 = vpop.f32.mrb[91].mxu1  ;;  %1800 = vmax.xlane.f32.xlu0 %v3791_v29 }
 0x33a   :  { %v3802_v35 = vadd.f32 %v3692_v42, %v1592_v33 }
 0x33b   :  { %1802 = vmax.xlane.f32.xlu1 %v3794_v32 }
 0x33d   :  { %1796 = vmax.xlane.f32.xlu0 %v3798_v34 }
 0x33f   :  { %1798 = vmax.xlane.f32.xlu1 %v3802_v35 }
 0x346   :  { %v2773_v36 = vpop.f32.mrb[92].mxu1 }
 0x347   :  { %v3807_v37 = vadd.f32 %v2773_v36, %v3692_v42  ;;  %v1605_v39 = vpop.f32.mrb[93].mxu1 }
 0x348   :  { %v2774_v40 = vpop.f32.mrb[94].mxu1  ;;  %v3814_v44 = vadd.f32 %v3692_v42, %v1605_v39 }
 0x349   :  { %v3810_v41 = vadd.f32 %v2774_v40, %v3692_v42  ;;  %v1608_v43 = vpop.f32.mrb[95].mxu1  ;;  %1808 = vmax.xlane.f32.xlu0 %v3807_v37 }
 0x34a   :  { %v3818_v16 = vadd.f32 %v3692_v42, %v1608_v43 }
 0x34b   :  { %1810 = vmax.xlane.f32.xlu1 %v3810_v41 }
 0x34d   :  { %1804 = vmax.xlane.f32.xlu0 %v3814_v44 }
 0x34f   :  { %1806 = vmax.xlane.f32.xlu1 %v3818_v16 }
 0x356   :  { %v2777_v46 = vpop.f32.mrb[96].mxu1 }
 0x357   :  { %v3823_v38 = vadd.f32 %v2777_v46, %v3692_v42  ;;  %v1621_v48 = vpop.f32.mrb[97].mxu1 }
 0x358   :  { %v2778_v51 = vpop.f32.mrb[98].mxu1  ;;  %v3830_v56 = vadd.f32 %v3692_v42, %v1621_v48 }
 0x359   :  { %v3826_v53 = vadd.f32 %v2778_v51, %v3692_v42  ;;  %v1624_v54 = vpop.f32.mrb[99].mxu1  ;;  %1816 = vmax.xlane.f32.xlu0 %v3823_v38 }
 0x35a   :  { %v3834_v59 = vadd.f32 %v3692_v42, %v1624_v54 }
 0x35b   :  { %1818 = vmax.xlane.f32.xlu1 %v3826_v53 }
 0x35d   :  { %1812 = vmax.xlane.f32.xlu0 %v3830_v56 }
 0x35f   :  { %1814 = vmax.xlane.f32.xlu1 %v3834_v59 }
 0x366   :  { %v2781_v61 = vpop.f32.mrb[100].mxu1 }
 0x367   :  { %v3839_v62 = vadd.f32 %v2781_v61, %v3692_v42  ;;  %v1637_v0 = vpop.f32.mrb[101].mxu1 }
 0x368   :  { %v2782_v3 = vpop.f32.mrb[102].mxu1  ;;  %v3846_v8 = vadd.f32 %v3692_v42, %v1637_v0 }
 0x369   :  { %v3842_v5 = vadd.f32 %v2782_v3, %v3692_v42  ;;  %v1640_v6 = vpop.f32.mrb[103].mxu1  ;;  %1824 = vmax.xlane.f32.xlu0 %v3839_v62 }
 0x36a   :  { %v3850_v11 = vadd.f32 %v3692_v42, %v1640_v6 }
 0x36b   :  { %1826 = vmax.xlane.f32.xlu1 %v3842_v5 }
 0x36d   :  { %1820 = vmax.xlane.f32.xlu0 %v3846_v8 }
 0x36f   :  { %1822 = vmax.xlane.f32.xlu1 %v3850_v11 }
 0x376   :  { %v2785_v13 = vpop.f32.mrb[104].mxu1 }
 0x377   :  { %v3855_v14 = vadd.f32 %v2785_v13, %v3692_v42  ;;  %v1653_v17 = vpop.f32.mrb[105].mxu1 }
 0x378   :  { %v2786_v20 = vpop.f32.mrb[106].mxu1  ;;  %v3862_v25 = vadd.f32 %v3692_v42, %v1653_v17 }
 0x379   :  { %v3858_v22 = vadd.f32 %v2786_v20, %v3692_v42  ;;  %v1656_v23 = vpop.f32.mrb[107].mxu1  ;;  %1832 = vmax.xlane.f32.xlu0 %v3855_v14 }
 0x37a   :  { %v3866_v28 = vadd.f32 %v3692_v42, %v1656_v23 }
 0x37b   :  { %1834 = vmax.xlane.f32.xlu1 %v3858_v22 }
 0x37d   :  { %1828 = vmax.xlane.f32.xlu0 %v3862_v25 }
 0x37f   :  { %1830 = vmax.xlane.f32.xlu1 %v3866_v28 }
 0x380   :  { %v1753_v30 = vpop.xlane.xlu1 %1752 }
 0x381   :  { %v3871_v31 = vsub.f32 %v3695_v45, %v1753_v30  ;;  %v1749_v33 = vpop.xlane.xlu0 %1748 }
 0x382   :  { %v3874_v36 = vsub.f32 %v3698_v47, %v1749_v33 }
 0x383   :  { %v1944_v39 = vmul.f32 1.442695, %v3871_v31 }
 0x384   :  { %v1755_v40 = vpop.xlane.xlu1 %1754  ;;  %v1940_v48 = vmul.f32 1.442695, %v3874_v36 }
 0x385   :  { %2939 = vpow2.f32 %v1944_v39  ;;  %v3878_v43 = vsub.f32 %v3703_v49, %v1755_v40  ;;  %v1751_v46 = vpop.xlane.xlu0 %1750 }
 0x386   :  { %v3882_v51 = vsub.f32 %v3706_v50, %v1751_v46  ;;  %v2789_v54 = vpop.f32.mrb[108].mxu1 }
 0x387   :  { %v1946_v45 = vmul.f32 1.442695, %v3878_v43  ;;  %v3886_v61 = vadd.f32 %v2789_v54, %v3692_v42  ;;  %v1669_v47 = vpop.f32.mrb[109].mxu1 }
 0x388   :  { %v2790_v0 = vpop.f32.mrb[110].mxu1  ;;  %v1942_v3 = vmul.f32 1.442695, %v3882_v51  ;;  %v3897_v20 = vadd.f32 %v3692_v42, %v1669_v47 }
 0x389   :  { %2941 = vpow2.f32 %v1946_v45  ;;  %v3890_v49 = vadd.f32 %v2790_v0, %v3692_v42  ;;  %v1672_v6 = vpop.f32.mrb[111].mxu1  ;;  %1840 = vmax.xlane.f32.xlu0 %v3886_v61  ;;  %v1761_v13 = vpop.xlane.xlu0 %1760 }
 0x38a   :  { %2943 = vpow2.f32 %v1940_v48  ;;  %v3894_v50 = vsub.f32 %v3711_v52, %v1761_v13  ;;  %v1763_v17 = vpop.xlane.xlu1 %1762  ;;  %v3905_v33 = vadd.f32 %v3692_v42, %v1672_v6 }
 0x38b   :  { %v3900_v23 = vsub.f32 %v3714_v55, %v1763_v17  ;;  %1842 = vmax.xlane.f32.xlu1 %v3890_v49  ;;  %2945 = vpow2.f32 %v1942_v3 }
 0x38c   :  { %v1952_v30 = vmul.f32 1.442695, %v3894_v50 }
 0x38d   :  { %v1954_v39 = vmul.f32 1.442695, %v3900_v23  ;;  %1836 = vmax.xlane.f32.xlu0 %v3897_v20  ;;  %v1757_v52 = vpop.xlane.xlu0 %1756 }
 0x38e   :  { %2947 = vpow2.f32 %v1952_v30  ;;  %v3910_v40 = vsub.f32 %v3719_v57, %v1757_v52  ;;  %v1759_v46 = vpop.xlane.xlu1 %1758 }
 0x38f   :  { %v2940_v55 = vpop.eup %2939  ;;  %1838 = vmax.xlane.f32.xlu1 %v3905_v33  ;;  %2949 = vpow2.f32 %v1954_v39  ;;  %v3914_v48 = vsub.f32 %v3722_v58, %v1759_v46 }
 0x390   :  { %4305 = vst [vmem:[#allocation5_spill] sm:$0xff] %v3910_v40  ;;  %v1948_v45 = vmul.f32 1.442695, %v3910_v40 }
 0x391   :  { %4306 = vst [vmem:[#allocation6_spill] sm:$0xff] %v3914_v48  ;;  %2072 = vadd.xlane.f32.xlu0 %v2940_v55  ;;  %v1769_v54 = vpop.xlane.xlu0 %1768  ;;  %v1950_v6 = vmul.f32 1.442695, %v3914_v48 }
 0x392   :  { %v1771_v47 = vpop.xlane.xlu1 %1770  ;;  %2951 = vpow2.f32 %v1948_v45  ;;  %v3919_v13 = vsub.f32 %v3726_v60, %v1769_v54 }
 0x393   :  { %v2942_v0 = vpop.eup %2941  ;;  %2953 = vpow2.f32 %v1950_v6  ;;  %v3922_v55 = vsub.f32 %v3730_v63, %v1771_v47 }
 0x394   :  { %v2944_v3 = vpop.eup %2943  ;;  %2074 = vadd.xlane.f32.xlu1 %v2942_v0 }
 0x395   :  { %2068 = vadd.xlane.f32.xlu0 %v2944_v3  ;;  %v1765_v57 = vpop.xlane.xlu0 %1764  ;;  %v2946_v30 = vpop.eup %2945  ;;  %v1960_v3 = vmul.f32 1.442695, %v3919_v13  ;;  %v1962_v40 = vmul.f32 1.442695, %v3922_v55 }
 0x396   :  { %v2793_v17 = vpop.f32.mrb[112].mxu1  ;;  %v1767_v52 = vpop.xlane.xlu1 %1766  ;;  %v3926_v45 = vsub.f32 %v3735_v1, %v1765_v57 }
 0x397   :  { %v1685_v58 = vpop.f32.mrb[113].mxu1  ;;  %v3929_v54 = vadd.f32 %v2793_v17, %v3692_v42  ;;  %v3933_v6 = vsub.f32 %v3738_v2, %v1767_v52  ;;  %2955 = vpow2.f32 %v1960_v3 }
 0x398   :  { %v2948_v39 = vpop.eup %2947  ;;  %v2794_v46 = vpop.f32.mrb[114].mxu1  ;;  %2070 = vadd.xlane.f32.xlu1 %v2946_v30  ;;  %v1956_v63 = vmul.f32 1.442695, %v3926_v45  ;;  %2957 = vpow2.f32 %v1962_v40 }
 0x399   :  { %v1688_v0 = vpop.f32.mrb[115].mxu1  ;;  %2080 = vadd.xlane.f32.xlu0 %v2948_v39  ;;  %v2950_v60 = vpop.eup %2949  ;;  %4307 = vst [vmem:[#allocation7_spill] sm:$0xff] %v3933_v6  ;;  %v3938_v47 = vadd.f32 %v2794_v46, %v3692_v42  ;;  %v1958_v30 = vmul.f32 1.442695, %v3933_v6  ;;  %v3950_v46 = vadd.f32 %v3692_v42, %v1685_v58 }
 0x39a   :  { %v1777_v48 = vpop.xlane.xlu0 %1776  ;;  %v1779_v57 = vpop.xlane.xlu1 %1778  ;;  %2959 = vpow2.f32 %v1956_v63  ;;  %v3955_v40 = vadd.f32 %v3692_v42, %v1688_v0 }
 0x39b   :  { %v3941_v1 = vsub.f32 %v3742_v4, %v1777_v48  ;;  %v3946_v2 = vsub.f32 %v3746_v7, %v1779_v57  ;;  %2961 = vpow2.f32 %v1958_v30 }
 0x39c   :  { %2082 = vadd.xlane.f32.xlu1 %v2950_v60  ;;  %v2952_v17 = vpop.eup %2951 }
 0x39d   :  { %1848 = vmax.xlane.f32.xlu0 %v3929_v54  ;;  %4308 = vst [vmem:[#allocation8_spill] sm:$0xff] %v3941_v1  ;;  %4309 = vst [vmem:[#allocation9_spill] sm:$0xff] %v3946_v2  ;;  %v1968_v39 = vmul.f32 1.442695, %v3941_v1  ;;  %v2954_v52 = vpop.eup %2953  ;;  %v1970_v48 = vmul.f32 1.442695, %v3946_v2 }
 0x39e   :  { %v1773_v4 = vpop.xlane.xlu0 %1772  ;;  %v1775_v3 = vpop.xlane.xlu1 %1774 }
 0x39f   :  { %2963 = vpow2.f32 %v1968_v39  ;;  %v3958_v7 = vsub.f32 %v3751_v9, %v1773_v4 }
 0x3a0   :  { %1850 = vmax.xlane.f32.xlu1 %v3938_v47  ;;  %2965 = vpow2.f32 %v1970_v48 }
 0x3a1   :  { %2076 = vadd.xlane.f32.xlu0 %v2952_v17  ;;  %4310 = vst [vmem:[#allocation10_spill] sm:$0xff] %v3958_v7  ;;  %v2956_v57 = vpop.eup %2955  ;;  %v3962_v17 = vsub.f32 %v3754_v10, %v1775_v3  ;;  %v1964_v0 = vmul.f32 1.442695, %v3958_v7 }
 0x3a2   :  { %v2958_v39 = vpop.eup %2957 }
 0x3a3   :  { %4311 = vst [vmem:[#allocation11_spill] sm:$0xff] %v3962_v17  ;;  %v1966_v4 = vmul.f32 1.442695, %v3962_v17  ;;  %2967 = vpow2.f32 %v1964_v0 }
 0x3a4   :  { %2078 = vadd.xlane.f32.xlu1 %v2954_v52  ;;  %v2960_v2 = vpop.eup %2959 }
 0x3a5   :  { %1844 = vmax.xlane.f32.xlu0 %v3950_v46  ;;  %v2962_v48 = vpop.eup %2961  ;;  %2969 = vpow2.f32 %v1966_v4 }
 0x3a6   :  { %v2797_v60 = vpop.f32.mrb[116].mxu1  ;;  %v1785_v30 = vpop.xlane.xlu0 %1784 }
 0x3a7   :  { %v1701_v63 = vpop.f32.mrb[117].mxu1  ;;  %v3967_v1 = vsub.f32 %v3759_v12, %v1785_v30  ;;  %v3977_v0 = vadd.f32 %v2797_v60, %v3692_v42 }
 0x3a8   :  { %v2798_v58 = vpop.f32.mrb[118].mxu1  ;;  %1846 = vmax.xlane.f32.xlu1 %v3955_v40  ;;  %v1787_v9 = vpop.xlane.xlu1 %1786 }
 0x3a9   :  { %v1704_v52 = vpop.f32.mrb[119].mxu1  ;;  %2088 = vadd.xlane.f32.xlu0 %v2956_v57  ;;  %4312 = vst [vmem:[#allocation12_spill] sm:$0xff] %v3967_v1  ;;  %v2964_v10 = vpop.eup %2963  ;;  %v3970_v3 = vsub.f32 %v3762_v15, %v1787_v9  ;;  %v1976_v57 = vmul.f32 1.442695, %v3967_v1  ;;  %v3985_v15 = vadd.f32 %v2798_v58, %v3692_v42 }
 0x3aa   :  { %v1781_v6 = vpop.xlane.xlu0 %1780 }
 0x3ab   :  { %4313 = vst [vmem:[#allocation13_spill] sm:$0xff] %v3970_v3  ;;  %v1978_v12 = vmul.f32 1.442695, %v3970_v3  ;;  %2971 = vpow2.f32 %v1976_v57  ;;  %v3995_v57 = vadd.f32 %v3692_v42, %v1704_v52 }
 0x3ac   :  { %2090 = vadd.xlane.f32.xlu1 %v2958_v39  ;;  %v3974_v39 = vsub.f32 %v3766_v18, %v1781_v6  ;;  %v1783_v17 = vpop.xlane.xlu1 %1782 }
 0x3ad   :  { %2084 = vadd.xlane.f32.xlu0 %v2960_v2  ;;  %v2966_v2 = vpop.eup %2965  ;;  %v3981_v30 = vsub.f32 %v3770_v19, %v1783_v17  ;;  %2973 = vpow2.f32 %v1978_v12  ;;  %v3991_v17 = vadd.f32 %v3692_v42, %v1701_v63  ;;  %4316 = vst [vmem:[#allocation16_spill] sm:$0xff] %v3995_v57 }
 0x3ae   :  { %4314 = vst [vmem:[#allocation14_spill] sm:$0xff] %v3974_v39  ;;  %v1972_v18 = vmul.f32 1.442695, %v3974_v39  ;;  %v2968_v4 = vpop.eup %2967 }
 0x3af   :  { %4315 = vst [vmem:[#allocation15_spill] sm:$0xff] %v3981_v30  ;;  %v1974_v60 = vmul.f32 1.442695, %v3981_v30  ;;  %v2970_v19 = vpop.eup %2969 }
 0x3b0   :  { %2086 = vadd.xlane.f32.xlu1 %v2962_v48  ;;  %2975 = vpow2.f32 %v1972_v18 }
 0x3b1   :  { %2096 = vadd.xlane.f32.xlu0 %v2964_v10  ;;  %2977 = vpow2.f32 %v1974_v60 }
 0x3b4   :  { %2098 = vadd.xlane.f32.xlu1 %v2966_v2 }
 0x3b5   :  { %1856 = vmax.xlane.f32.xlu0 %v3977_v0  ;;  %v2972_v2 = vpop.eup %2971 }
 0x3b6   :  { %v2801_v6 = vpop.f32.mrb[120].mxu1  ;;  %v1793_v58 = vpop.xlane.xlu0 %1792 }
 0x3b7   :  { %v1717_v9 = vpop.f32.mrb[121].mxu1  ;;  %v2974_v12 = vpop.eup %2973  ;;  %v4002_v3 = vadd.f32 %v2801_v6, %v3692_v42 }
 0x3b8   :  { %v2802_v48 = vpop.f32.mrb[122].mxu1  ;;  %1858 = vmax.xlane.f32.xlu1 %v3985_v15  ;;  %v1795_v39 = vpop.xlane.xlu1 %1794  ;;  %v4016_v6 = vadd.f32 %v3692_v42, %v1717_v9 }
 0x3b9   :  { %v1720_v10 = vpop.f32.mrb[123].mxu1  ;;  %2092 = vadd.xlane.f32.xlu0 %v2968_v4 }
 0x3ba   :  { %v1789_v4 = vpop.xlane.xlu0 %1788  ;;  %v2976_v18 = vpop.eup %2975 }
 0x3bb   :  { %v3999_v63 = vsub.f32 %v3782_v26, %v1789_v4  ;;  %v2978_v30 = vpop.eup %2977  ;;  %v4012_v26 = vadd.f32 %v2802_v48, %v3692_v42  ;;  %v4026_v48 = vadd.f32 %v3692_v42, %v1720_v10 }
 0x3bc   :  { %2094 = vadd.xlane.f32.xlu1 %v2970_v19  ;;  %v1791_v60 = vpop.xlane.xlu1 %1790 }
 0x3bd   :  { %1852 = vmax.xlane.f32.xlu0 %v3991_v17  ;;  %v4005_v7 = vsub.f32 %v3786_v27, %v1791_v60  ;;  %v1980_v4 = vmul.f32 1.442695, %v3999_v63  ;;  %v4020_v27 = vsub.f32 %v3778_v24, %v1795_v39 }
 0x3bf   :  { %2979 = vpow2.f32 %v1980_v4  ;;  %v1986_v24 = vmul.f32 1.442695, %v4020_v27 }
 0x3c0   :  { %1854 = vmax.xlane.f32.xlu1 %v3995_v57 }
 0x3c1   :  { %2104 = vadd.xlane.f32.xlu0 %v2972_v2 }
 0x3c4   :  { %2106 = vadd.xlane.f32.xlu1 %v2974_v12  ;;  %v4009_v12 = vsub.f32 %v3775_v21, %v1793_v58 }
 0x3c5   :  { %2100 = vadd.xlane.f32.xlu0 %v2976_v18 }
 0x3c6   :  { %v2805_v19 = vpop.f32.mrb[124].mxu1  ;;  %v1801_v2 = vpop.xlane.xlu0 %1800  ;;  %v1984_v21 = vmul.f32 1.442695, %v4009_v12 }
 0x3c7   :  { %v1733_v52 = vpop.f32.mrb[125].mxu1  ;;  %v4029_v58 = vsub.f32 %v3791_v29, %v1801_v2  ;;  %v4032_v9 = vadd.f32 %v2805_v19, %v3692_v42 }
 0x3c8   :  { %v2806_v1 = vpop.f32.mrb[126].mxu1  ;;  %2102 = vadd.xlane.f32.xlu1 %v2978_v30  ;;  %v1803_v18 = vpop.xlane.xlu1 %1802  ;;  %v1982_v30 = vmul.f32 1.442695, %v4005_v7  ;;  %v4048_v4 = vadd.f32 %v3692_v42, %v1733_v52 }
 0x3c9   :  { %v1736_v57 = vpop.f32.mrb[127].mxu1  ;;  %1864 = vmax.xlane.f32.xlu0 %v4002_v3  ;;  %v4037_v39 = vsub.f32 %v3794_v32, %v1803_v18  ;;  %v1992_v10 = vmul.f32 1.442695, %v4029_v58  ;;  %v4042_v29 = vadd.f32 %v2806_v1, %v3692_v42 }
 0x3ca   :  { %v1797_v60 = vpop.xlane.xlu0 %1796  ;;  %2981 = vpow2.f32 %v1982_v30  ;;  %v4057_v1 = vadd.f32 %v3692_v42, %v1736_v57 }
 0x3cb   :  { %2983 = vpow2.f32 %v1984_v21  ;;  %v4045_v19 = vsub.f32 %v3798_v34, %v1797_v60  ;;  %v1994_v32 = vmul.f32 1.442695, %v4037_v39  ;;  %v2980_v21 = vpop.eup %2979 }
 0x3cc   :  { %1866 = vmax.xlane.f32.xlu1 %v4012_v26  ;;  %v1799_v2 = vpop.xlane.xlu1 %1798  ;;  %2985 = vpow2.f32 %v1986_v24 }
 0x3cd   :  { %1860 = vmax.xlane.f32.xlu0 %v4016_v6  ;;  %v4053_v18 = vsub.f32 %v3802_v35, %v1799_v2  ;;  %2987 = vpow2.f32 %v1992_v10  ;;  %v1988_v34 = vmul.f32 1.442695, %v4045_v19 }
 0x3ce   :  { %2989 = vpow2.f32 %v1994_v32 }
 0x3cf   :  { %4317 = vst [vmem:[#allocation17_spill] sm:$0xff] %v4053_v18  ;;  %v1990_v35 = vmul.f32 1.442695, %v4053_v18  ;;  %2991 = vpow2.f32 %v1988_v34 }
 0x3d0   :  { %1862 = vmax.xlane.f32.xlu1 %v4026_v48 }
 0x3d1   :  { %1872 = vmax.xlane.f32.xlu0 %v4032_v9  ;;  %2993 = vpow2.f32 %v1990_v35 }
 0x3d4   :  { %1874 = vmax.xlane.f32.xlu1 %v4042_v29  ;;  %v2982_v10 = vpop.eup %2981 }
 0x3d5   :  { %1868 = vmax.xlane.f32.xlu0 %v4048_v4 }
 0x3d6   :  { %v1809_v30 = vpop.xlane.xlu0 %1808 }
 0x3d7   :  { %v4061_v52 = vsub.f32 %v3807_v37, %v1809_v30  ;;  %v2984_v37 = vpop.eup %2983 }
 0x3d8   :  { %v1811_v60 = vpop.xlane.xlu1 %1810  ;;  %1870 = vmax.xlane.f32.xlu1 %v4057_v1  ;;  %v2986_v34 = vpop.eup %2985 }
 0x3d9   :  { %v4066_v24 = vsub.f32 %v3810_v41, %v1811_v60  ;;  %2108 = vadd.xlane.f32.xlu0 %v2980_v21  ;;  %v2000_v42 = vmul.f32 1.442695, %v4061_v52  ;;  %v2988_v21 = vpop.eup %2987 }
 0x3da   :  { %v1805_v57 = vpop.xlane.xlu0 %1804  ;;  %v2990_v60 = vpop.eup %2989 }
 0x3db   :  { %v4070_v2 = vsub.f32 %v3814_v44, %v1805_v57  ;;  %v2002_v32 = vmul.f32 1.442695, %v4066_v24  ;;  %2995 = vpow2.f32 %v2000_v42  ;;  %v2992_v57 = vpop.eup %2991 }
 0x3dc   :  { %v1807_v30 = vpop.xlane.xlu1 %1806  ;;  %2110 = vadd.xlane.f32.xlu1 %v2982_v10 }
 0x3dd   :  { %v4074_v18 = vsub.f32 %v3818_v16, %v1807_v30  ;;  %2112 = vadd.xlane.f32.xlu0 %v2984_v37  ;;  %v1996_v41 = vmul.f32 1.442695, %v4070_v2  ;;  %2997 = vpow2.f32 %v2002_v32  ;;  %v2994_v16 = vpop.eup %2993 }
 0x3df   :  { %v1998_v44 = vmul.f32 1.442695, %v4074_v18  ;;  %2999 = vpow2.f32 %v1996_v41 }
 0x3e0   :  { %2114 = vadd.xlane.f32.xlu1 %v2986_v34 }
 0x3e1   :  { %2120 = vadd.xlane.f32.xlu0 %v2988_v21  ;;  %3001 = vpow2.f32 %v1998_v44 }
 0x3e4   :  { %2122 = vadd.xlane.f32.xlu1 %v2990_v60 }
 0x3e5   :  { %2116 = vadd.xlane.f32.xlu0 %v2992_v57  ;;  %v2996_v42 = vpop.eup %2995 }
 0x3e6   :  { %v1817_v35 = vpop.xlane.xlu0 %1816 }
 0x3e7   :  { %v4079_v10 = vsub.f32 %v3823_v38, %v1817_v35  ;;  %v2998_v34 = vpop.eup %2997 }
 0x3e8   :  { %v1819_v37 = vpop.xlane.xlu1 %1818  ;;  %2118 = vadd.xlane.f32.xlu1 %v2994_v16 }
 0x3e9   :  { %v2008_v30 = vmul.f32 1.442695, %v4079_v10  ;;  %v4083_v32 = vsub.f32 %v3826_v53, %v1819_v37  ;;  %2128 = vadd.xlane.f32.xlu0 %v2996_v42  ;;  %v3000_v60 = vpop.eup %2999 }
 0x3ea   :  { %v1813_v41 = vpop.xlane.xlu0 %1812 }
 0x3eb   :  { %3003 = vpow2.f32 %v2008_v30  ;;  %v2010_v21 = vmul.f32 1.442695, %v4083_v32  ;;  %v4087_v44 = vsub.f32 %v3830_v56, %v1813_v41  ;;  %v3002_v53 = vpop.eup %3001 }
 0x3ec   :  { %v1815_v38 = vpop.xlane.xlu1 %1814  ;;  %2130 = vadd.xlane.f32.xlu1 %v2998_v34 }
 0x3ed   :  { %3005 = vpow2.f32 %v2010_v21  ;;  %v2004_v57 = vmul.f32 1.442695, %v4087_v44  ;;  %v4091_v35 = vsub.f32 %v3834_v59, %v1815_v38  ;;  %2124 = vadd.xlane.f32.xlu0 %v3000_v60 }
 0x3ef   :  { %3007 = vpow2.f32 %v2004_v57  ;;  %v2006_v16 = vmul.f32 1.442695, %v4091_v35 }
 0x3f0   :  { %2126 = vadd.xlane.f32.xlu1 %v3002_v53 }
 0x3f1   :  { %3009 = vpow2.f32 %v2006_v16 }
 0x3f5   :  { %v3004_v42 = vpop.eup %3003 }
 0x3f6   :  { %2136 = vadd.xlane.f32.xlu0 %v3004_v42  ;;  %v1825_v56 = vpop.xlane.xlu0 %1824 }
 0x3f7   :  { %v3006_v37 = vpop.eup %3005  ;;  %v4095_v30 = vsub.f32 %v3839_v62, %v1825_v56 }
 0x3f8   :  { %v1827_v41 = vpop.xlane.xlu1 %1826  ;;  %2138 = vadd.xlane.f32.xlu1 %v3006_v37 }
 0x3f9   :  { %v3008_v34 = vpop.eup %3007  ;;  %v2016_v59 = vmul.f32 1.442695, %v4095_v30  ;;  %v4099_v21 = vsub.f32 %v3842_v5, %v1827_v41 }
 0x3fa   :  { %2132 = vadd.xlane.f32.xlu0 %v3008_v34  ;;  %v1821_v60 = vpop.xlane.xlu0 %1820 }
 0x3fb   :  { %v3010_v38 = vpop.eup %3009  ;;  %3011 = vpow2.f32 %v2016_v59  ;;  %v2018_v57 = vmul.f32 1.442695, %v4099_v21  ;;  %v4103_v53 = vsub.f32 %v3846_v8, %v1821_v60 }
 0x3fc   :  { %v1823_v16 = vpop.xlane.xlu1 %1822  ;;  %2134 = vadd.xlane.f32.xlu1 %v3010_v38 }
 0x3fd   :  { %3013 = vpow2.f32 %v2018_v57  ;;  %v2012_v62 = vmul.f32 1.442695, %v4103_v53  ;;  %v4107_v42 = vsub.f32 %v3850_v11, %v1823_v16 }
 0x3ff   :  { %3015 = vpow2.f32 %v2012_v62  ;;  %v2014_v5 = vmul.f32 1.442695, %v4107_v42 }
 0x401   :  { %3017 = vpow2.f32 %v2014_v5 }
 0x405   :  { %v3012_v56 = vpop.eup %3011 }
 0x406   :  { %2144 = vadd.xlane.f32.xlu0 %v3012_v56  ;;  %v1833_v37 = vpop.xlane.xlu0 %1832 }
 0x407   :  { %v3014_v41 = vpop.eup %3013  ;;  %v4111_v34 = vsub.f32 %v3855_v14, %v1833_v37 }
 0x408   :  { %v1835_v8 = vpop.xlane.xlu1 %1834  ;;  %2146 = vadd.xlane.f32.xlu1 %v3014_v41 }
 0x409   :  { %v3016_v59 = vpop.eup %3015  ;;  %v2024_v60 = vmul.f32 1.442695, %v4111_v34  ;;  %v4115_v38 = vsub.f32 %v3858_v22, %v1835_v8 }
 0x40a   :  { %2140 = vadd.xlane.f32.xlu0 %v3016_v59  ;;  %v1829_v11 = vpop.xlane.xlu0 %1828 }
 0x40b   :  { %v3018_v57 = vpop.eup %3017  ;;  %3019 = vpow2.f32 %v2024_v60  ;;  %v2026_v16 = vmul.f32 1.442695, %v4115_v38  ;;  %v4119_v62 = vsub.f32 %v3862_v25, %v1829_v11 }
 0x40c   :  { %v1831_v5 = vpop.xlane.xlu1 %1830  ;;  %2142 = vadd.xlane.f32.xlu1 %v3018_v57 }
 0x40d   :  { %3021 = vpow2.f32 %v2026_v16  ;;  %v2020_v14 = vmul.f32 1.442695, %v4119_v62  ;;  %v4123_v56 = vsub.f32 %v3866_v28, %v1831_v5 }
 0x40f   :  { %3023 = vpow2.f32 %v2020_v14  ;;  %v2022_v22 = vmul.f32 1.442695, %v4123_v56 }
 0x411   :  { %3025 = vpow2.f32 %v2022_v22 }
 0x415   :  { %v3020_v37 = vpop.eup %3019 }
 0x416   :  { %2152 = vadd.xlane.f32.xlu0 %v3020_v37  ;;  %v1841_v41 = vpop.xlane.xlu0 %1840 }
 0x417   :  { %v3022_v8 = vpop.eup %3021  ;;  %v4127_v59 = vsub.f32 %v3886_v61, %v1841_v41 }
 0x418   :  { %v1843_v25 = vpop.xlane.xlu1 %1842  ;;  %2154 = vadd.xlane.f32.xlu1 %v3022_v8 }
 0x419   :  { %v3024_v60 = vpop.eup %3023  ;;  %v2032_v11 = vmul.f32 1.442695, %v4127_v59  ;;  %v4131_v57 = vsub.f32 %v3890_v49, %v1843_v25 }
 0x41a   :  { %2148 = vadd.xlane.f32.xlu0 %v3024_v60  ;;  %v1837_v28 = vpop.xlane.xlu0 %1836 }
 0x41b   :  { %v3026_v16 = vpop.eup %3025  ;;  %3027 = vpow2.f32 %v2032_v11  ;;  %v2034_v5 = vmul.f32 1.442695, %v4131_v57  ;;  %v4135_v14 = vsub.f32 %v3897_v20, %v1837_v28 }
 0x41c   :  { %v1839_v22 = vpop.xlane.xlu1 %1838  ;;  %2150 = vadd.xlane.f32.xlu1 %v3026_v16 }
 0x41d   :  { %4318 = vst [vmem:[#allocation18_spill] sm:$0xff] %v4135_v14  ;;  %3029 = vpow2.f32 %v2034_v5  ;;  %v2028_v61 = vmul.f32 1.442695, %v4135_v14  ;;  %v4139_v37 = vsub.f32 %v3905_v33, %v1839_v22 }
 0x41e   :  { %v2073_v41 = vpop.xlane.xlu0 %2072 }
 0x41f   :  { %4319 = vst [vmem:[#allocation19_spill] sm:$0xff] %v4139_v37  ;;  %3031 = vpow2.f32 %v2028_v61  ;;  %v2030_v49 = vmul.f32 1.442695, %v4139_v37 }
 0x420   :  { %3033 = vlog2.f32 %v2073_v41 }
 0x421   :  { %3035 = vpow2.f32 %v2030_v49  ;;  %v2075_v8 = vpop.xlane.xlu1 %2074 }
 0x422   :  { %3037 = vlog2.f32 %v2075_v8  ;;  %v2069_v25 = vpop.xlane.xlu0 %2068 }
 0x423   :  { %3039 = vlog2.f32 %v2069_v25 }
 0x425   :  { %v3028_v20 = vpop.eup %3027  ;;  %v2071_v60 = vpop.xlane.xlu1 %2070 }
 0x426   :  { %3041 = vlog2.f32 %v2071_v60  ;;  %2160 = vadd.xlane.f32.xlu0 %v3028_v20  ;;  %v2081_v11 = vpop.xlane.xlu0 %2080 }
 0x427   :  { %v3030_v28 = vpop.eup %3029  ;;  %3043 = vlog2.f32 %v2081_v11 }
 0x428   :  { %2162 = vadd.xlane.f32.xlu1 %v3030_v28 }
 0x429   :  { %v3032_v33 = vpop.eup %3031  ;;  %v2083_v16 = vpop.xlane.xlu1 %2082 }
 0x42a   :  { %v3034_v5 = vpop.eup %3033  ;;  %3045 = vlog2.f32 %v2083_v16  ;;  %2156 = vadd.xlane.f32.xlu0 %v3032_v33  ;;  %v1849_v22 = vpop.xlane.xlu0 %1848 }
 0x42b   :  { %v3036_v61 = vpop.eup %3035  ;;  %v2201_v41 = vmul.f32 0.6931472, %v3034_v5  ;;  %v4143_v49 = vsub.f32 %v3929_v54, %v1849_v22 }
 0x42c   :  { %v3038_v8 = vpop.eup %3037  ;;  %2158 = vadd.xlane.f32.xlu1 %v3036_v61 }
 0x42d   :  { %v3040_v25 = vpop.eup %3039  ;;  %v2326_v20 = vsub.f32 %v3871_v31, %v2201_v41  ;;  %v2203_v60 = vmul.f32 0.6931472, %v3038_v8  ;;  %v2040_v11 = vmul.f32 1.442695, %v4143_v49  ;;  %v1851_v28 = vpop.xlane.xlu1 %1850 }
 0x42e   :  { %v2197_v37 = vmul.f32 0.6931472, %v3040_v25  ;;  %v4148_v14 = vsub.f32 %v3938_v47, %v1851_v28  ;;  %v2077_v33 = vpop.xlane.xlu0 %2076 }
 0x42f   :  { %2390 = vst [vmem:[#allocation2 + $0x10] sm:$0xff] %v2326_v20  ;;  %v2327_v16 = vsub.f32 %v3878_v43, %v2203_v60  ;;  %3047 = vpow2.f32 %v2040_v11 }
 0x430   :  { %v3042_v54 = vpop.eup %3041  ;;  %v2324_v5 = vsub.f32 %v3874_v36, %v2197_v37  ;;  %v2042_v22 = vmul.f32 1.442695, %v4148_v14  ;;  %3049 = vlog2.f32 %v2077_v33 }
 0x431   :  { %v3044_v31 = vpop.eup %3043  ;;  %2391 = vst [vmem:[#allocation2 + $0x18] sm:$0xff] %v2327_v16  ;;  %v2199_v61 = vmul.f32 0.6931472, %v3042_v54  ;;  %v2079_v41 = vpop.xlane.xlu1 %2078 }
 0x432   :  { %2388 = vst [vmem:[#allocation2] sm:$0xff] %v2324_v5  ;;  %v2209_v8 = vmul.f32 0.6931472, %v3044_v31  ;;  %3051 = vpow2.f32 %v2042_v22  ;;  %v1845_v47 = vpop.xlane.xlu0 %1844 }
 0x433   :  { %v2325_v25 = vsub.f32 %v3882_v51, %v2199_v61  ;;  %3053 = vlog2.f32 %v2079_v41  ;;  %v4155_v43 = vsub.f32 %v3950_v46, %v1845_v47  ;;  %v4320_v61 = vld [vmem:[#allocation5_spill] sm:$0xff] }
 0x434   :  { %v3046_v20 = vpop.eup %3045  ;;  %v2330_v36 = vsub.f32 %v3894_v50, %v2209_v8 }
 0x435   :  { %2389 = vst [vmem:[#allocation2 + $0x8] sm:$0xff] %v2325_v25  ;;  %v2211_v37 = vmul.f32 0.6931472, %v3046_v20  ;;  %v2036_v60 = vmul.f32 1.442695, %v4155_v43  ;;  %v1847_v11 = vpop.xlane.xlu1 %1846  ;;  %v4321_v25 = vld [vmem:[#allocation6_spill] sm:$0xff] }
 0x436   :  { %2394 = vst [vmem:[#allocation2 + $0x30] sm:$0xff] %v2330_v36  ;;  %v4160_v28 = vsub.f32 %v3955_v40, %v1847_v11  ;;  %v2089_v33 = vpop.xlane.xlu0 %2088 }
 0x437   :  { %v2331_v16 = vsub.f32 %v3900_v23, %v2211_v37  ;;  %3055 = vpow2.f32 %v2036_v60 }
 0x438   :  { %v2038_v51 = vmul.f32 1.442695, %v4160_v28  ;;  %3057 = vlog2.f32 %v2089_v33 }
 0x439   :  { %v3048_v46 = vpop.eup %3047  ;;  %2395 = vst [vmem:[#allocation2 + $0x38] sm:$0xff] %v2331_v16  ;;  %v2091_v54 = vpop.xlane.xlu1 %2090 }
 0x43a   :  { %v3050_v50 = vpop.eup %3049  ;;  %3059 = vpow2.f32 %v2038_v51  ;;  %2168 = vadd.xlane.f32.xlu0 %v3048_v46  ;;  %v2085_v5 = vpop.xlane.xlu0 %2084 }
 0x43b   :  { %v2205_v22 = vmul.f32 0.6931472, %v3050_v50  ;;  %3061 = vlog2.f32 %v2091_v54 }
 0x43c   :  { %v3052_v31 = vpop.eup %3051  ;;  %3063 = vlog2.f32 %v2085_v5 }
 0x43d   :  { %v3054_v40 = vpop.eup %3053  ;;  %v2328_v41 = vsub.f32 %v4320_v61, %v2205_v22  ;;  %2170 = vadd.xlane.f32.xlu1 %v3052_v31  ;;  %v2087_v23 = vpop.xlane.xlu1 %2086 }
 0x43e   :  { %v2207_v8 = vmul.f32 0.6931472, %v3054_v40  ;;  %3065 = vlog2.f32 %v2087_v23  ;;  %v2097_v47 = vpop.xlane.xlu0 %2096 }
 0x43f   :  { %2392 = vst [vmem:[#allocation2 + $0x20] sm:$0xff] %v2328_v41  ;;  %3067 = vlog2.f32 %v2097_v47 }
 0x440   :  { %v2329_v20 = vsub.f32 %v4321_v25, %v2207_v8 }
 0x441   :  { %v3056_v36 = vpop.eup %3055  ;;  %v2099_v37 = vpop.xlane.xlu1 %2098 }
 0x442   :  { %v3058_v60 = vpop.eup %3057  ;;  %2393 = vst [vmem:[#allocation2 + $0x28] sm:$0xff] %v2329_v20  ;;  %3069 = vlog2.f32 %v2099_v37  ;;  %2164 = vadd.xlane.f32.xlu0 %v3056_v36  ;;  %v1857_v11 = vpop.xlane.xlu0 %1856  ;;  %v4322_v37 = vld [vmem:[#allocation7_spill] sm:$0xff] }
 0x443   :  { %v2217_v33 = vmul.f32 0.6931472, %v3058_v60  ;;  %v4167_v16 = vsub.f32 %v3977_v0, %v1857_v11 }
 0x444   :  { %v3060_v51 = vpop.eup %3059 }
 0x445   :  { %v3062_v46 = vpop.eup %3061  ;;  %v2334_v54 = vsub.f32 %v3919_v13, %v2217_v33  ;;  %v2048_v50 = vmul.f32 1.442695, %v4167_v16  ;;  %2166 = vadd.xlane.f32.xlu1 %v3060_v51  ;;  %v1859_v5 = vpop.xlane.xlu1 %1858  ;;  %v4323_v33 = vld [vmem:[#allocation8_spill] sm:$0xff] }
 0x446   :  { %v3064_v22 = vpop.eup %3063  ;;  %v2219_v31 = vmul.f32 0.6931472, %v3062_v46  ;;  %v4172_v40 = vsub.f32 %v3985_v15, %v1859_v5  ;;  %v2093_v61 = vpop.xlane.xlu0 %2092 }
 0x447   :  { %2398 = vst [vmem:[#allocation2 + $0x50] sm:$0xff] %v2334_v54  ;;  %v2213_v41 = vmul.f32 0.6931472, %v3064_v22  ;;  %3071 = vpow2.f32 %v2048_v50  ;;  %v4324_v50 = vld [vmem:[#allocation16_spill] sm:$0xff] }
 0x448   :  { %v3066_v23 = vpop.eup %3065  ;;  %v2335_v0 = vsub.f32 %v3922_v55, %v2219_v31  ;;  %v2050_v8 = vmul.f32 1.442695, %v4172_v40  ;;  %3073 = vlog2.f32 %v2093_v61  ;;  %v4325_v31 = vld [vmem:[#allocation9_spill] sm:$0xff] }
 0x449   :  { %v3068_v13 = vpop.eup %3067  ;;  %v2332_v47 = vsub.f32 %v3926_v45, %v2213_v41  ;;  %v2215_v25 = vmul.f32 0.6931472, %v3066_v23  ;;  %v2095_v20 = vpop.xlane.xlu1 %2094 }
 0x44a   :  { %2399 = vst [vmem:[#allocation2 + $0x58] sm:$0xff] %v2335_v0  ;;  %v2225_v36 = vmul.f32 0.6931472, %v3068_v13  ;;  %3075 = vpow2.f32 %v2050_v8  ;;  %v1853_v15 = vpop.xlane.xlu0 %1852 }
 0x44b   :  { %2396 = vst [vmem:[#allocation2 + $0x40] sm:$0xff] %v2332_v47  ;;  %v2333_v60 = vsub.f32 %v4322_v37, %v2215_v25  ;;  %3077 = vlog2.f32 %v2095_v20  ;;  %v4179_v11 = vsub.f32 %v3991_v17, %v1853_v15  ;;  %v4326_v20 = vld [vmem:[#allocation10_spill] sm:$0xff] }
 0x44c   :  { %v3070_v55 = vpop.eup %3069  ;;  %v2338_v51 = vsub.f32 %v4323_v33, %v2225_v36  ;;  %v4327_v33 = vld [vmem:[#allocation11_spill] sm:$0xff] }
 0x44d   :  { %2397 = vst [vmem:[#allocation2 + $0x48] sm:$0xff] %v2333_v60  ;;  %v2227_v46 = vmul.f32 0.6931472, %v3070_v55  ;;  %v2044_v45 = vmul.f32 1.442695, %v4179_v11  ;;  %v1855_v54 = vpop.xlane.xlu1 %1854 }
 0x44e   :  { %2402 = vst [vmem:[#allocation2 + $0x70] sm:$0xff] %v2338_v51  ;;  %v4184_v5 = vsub.f32 %v4324_v50, %v1855_v54  ;;  %v2105_v22 = vpop.xlane.xlu0 %2104 }
 0x44f   :  { %v2339_v61 = vsub.f32 %v4325_v31, %v2227_v46  ;;  %3079 = vpow2.f32 %v2044_v45 }
 0x450   :  { %v2046_v41 = vmul.f32 1.442695, %v4184_v5  ;;  %3081 = vlog2.f32 %v2105_v22 }
 0x451   :  { %v3072_v17 = vpop.eup %3071  ;;  %2403 = vst [vmem:[#allocation2 + $0x78] sm:$0xff] %v2339_v61  ;;  %v2107_v23 = vpop.xlane.xlu1 %2106 }
 0x452   :  { %v3074_v0 = vpop.eup %3073  ;;  %3083 = vpow2.f32 %v2046_v41  ;;  %2176 = vadd.xlane.f32.xlu0 %v3072_v17  ;;  %v2101_v8 = vpop.xlane.xlu0 %2100 }
 0x453   :  { %v2221_v13 = vmul.f32 0.6931472, %v3074_v0  ;;  %3085 = vlog2.f32 %v2107_v23  ;;  %v4328_v0 = vld [vmem:[#allocation12_spill] sm:$0xff] }
 0x454   :  { %v3076_v47 = vpop.eup %3075  ;;  %3087 = vlog2.f32 %v2101_v8 }
 0x455   :  { %v3078_v25 = vpop.eup %3077  ;;  %v2336_v36 = vsub.f32 %v4326_v20, %v2221_v13  ;;  %2178 = vadd.xlane.f32.xlu1 %v3076_v47  ;;  %v2103_v15 = vpop.xlane.xlu1 %2102 }
 0x456   :  { %v2223_v37 = vmul.f32 0.6931472, %v3078_v25  ;;  %3089 = vlog2.f32 %v2103_v15  ;;  %v1865_v60 = vpop.xlane.xlu0 %1864 }
 0x457   :  { %2400 = vst [vmem:[#allocation2 + $0x60] sm:$0xff] %v2336_v36  ;;  %v4190_v55 = vsub.f32 %v4002_v3, %v1865_v60 }
 0x458   :  { %v2337_v51 = vsub.f32 %v4327_v33, %v2223_v37  ;;  %v4329_v37 = vld [vmem:[#allocation13_spill] sm:$0xff] }
 0x459   :  { %v3080_v46 = vpop.eup %3079  ;;  %v2056_v45 = vmul.f32 1.442695, %v4190_v55  ;;  %v1867_v54 = vpop.xlane.xlu1 %1866 }
 0x45a   :  { %v3082_v50 = vpop.eup %3081  ;;  %2401 = vst [vmem:[#allocation2 + $0x68] sm:$0xff] %v2337_v51  ;;  %v4195_v22 = vsub.f32 %v4012_v26, %v1867_v54  ;;  %2172 = vadd.xlane.f32.xlu0 %v3080_v46  ;;  %v1861_v31 = vpop.xlane.xlu0 %1860  ;;  %v4330_v51 = vld [vmem:[#allocation14_spill] sm:$0xff] }
 0x45b   :  { %v2233_v61 = vmul.f32 0.6931472, %v3082_v50  ;;  %3091 = vpow2.f32 %v2056_v45  ;;  %v4198_v41 = vsub.f32 %v4016_v6, %v1861_v31  ;;  %v4331_v31 = vld [vmem:[#allocation15_spill] sm:$0xff] }
 0x45c   :  { %v3084_v3 = vpop.eup %3083  ;;  %v2058_v17 = vmul.f32 1.442695, %v4195_v22 }
 0x45d   :  { %v3086_v23 = vpop.eup %3085  ;;  %v2342_v8 = vsub.f32 %v4328_v0, %v2233_v61  ;;  %v2052_v13 = vmul.f32 1.442695, %v4198_v41  ;;  %2174 = vadd.xlane.f32.xlu1 %v3084_v3  ;;  %v1863_v47 = vpop.xlane.xlu1 %1862 }
 0x45e   :  { %v3088_v25 = vpop.eup %3087  ;;  %v2235_v26 = vmul.f32 0.6931472, %v3086_v23  ;;  %3093 = vpow2.f32 %v2058_v17  ;;  %v4204_v20 = vsub.f32 %v4026_v48, %v1863_v47  ;;  %v1873_v36 = vpop.xlane.xlu0 %1872 }
 0x45f   :  { %2406 = vst [vmem:[#allocation2 + $0x90] sm:$0xff] %v2342_v8  ;;  %v2229_v6 = vmul.f32 0.6931472, %v3088_v25  ;;  %3095 = vpow2.f32 %v2052_v13  ;;  %v4210_v54 = vsub.f32 %v4032_v9, %v1873_v36 }
 0x460   :  { %v3090_v15 = vpop.eup %3089  ;;  %v2343_v60 = vsub.f32 %v4329_v37, %v2235_v26  ;;  %v2054_v33 = vmul.f32 1.442695, %v4204_v20 }
 0x461   :  { %v2340_v46 = vsub.f32 %v4330_v51, %v2229_v6  ;;  %v2231_v45 = vmul.f32 0.6931472, %v3090_v15  ;;  %v1875_v50 = vpop.xlane.xlu1 %1874  ;;  %v2064_v23 = vmul.f32 1.442695, %v4210_v54 }
 0x462   :  { %2407 = vst [vmem:[#allocation2 + $0x98] sm:$0xff] %v2343_v60  ;;  %3097 = vpow2.f32 %v2054_v33  ;;  %v1869_v48 = vpop.xlane.xlu0 %1868  ;;  %v4218_v0 = vsub.f32 %v4042_v29, %v1875_v50 }
 0x463   :  { %2404 = vst [vmem:[#allocation2 + $0x80] sm:$0xff] %v2340_v46  ;;  %v2341_v61 = vsub.f32 %v4331_v31, %v2231_v45  ;;  %v4214_v3 = vsub.f32 %v4048_v4, %v1869_v48 }
 0x464   :  { %v2066_v36 = vmul.f32 1.442695, %v4218_v0 }
 0x465   :  { %v3092_v17 = vpop.eup %3091  ;;  %2405 = vst [vmem:[#allocation2 + $0x88] sm:$0xff] %v2341_v61  ;;  %v2060_v9 = vmul.f32 1.442695, %v4214_v3  ;;  %v1871_v8 = vpop.xlane.xlu1 %1870 }
 0x466   :  { %v4222_v13 = vsub.f32 %v4057_v1, %v1871_v8  ;;  %2184 = vadd.xlane.f32.xlu0 %v3092_v17  ;;  %v2109_v47 = vpop.xlane.xlu0 %2108 }
 0x467   :  { %3099 = vpow2.f32 %v2060_v9 }
 0x468   :  { %v3094_v25 = vpop.eup %3093  ;;  %v2062_v4 = vmul.f32 1.442695, %v4222_v13  ;;  %3101 = vlog2.f32 %v2109_v47 }
 0x469   :  { %v3096_v26 = vpop.eup %3095  ;;  %3103 = vpow2.f32 %v2064_v23  ;;  %2186 = vadd.xlane.f32.xlu1 %v3094_v25  ;;  %v2111_v29 = vpop.xlane.xlu1 %2110 }
 0x46a   :  { %3105 = vpow2.f32 %v2062_v4  ;;  %2180 = vadd.xlane.f32.xlu0 %v3096_v26  ;;  %v2113_v6 = vpop.xlane.xlu0 %2112 }
 0x46b   :  { %3107 = vlog2.f32 %v2111_v29 }
 0x46c   :  { %v3098_v15 = vpop.eup %3097  ;;  %3109 = vlog2.f32 %v2113_v6 }
 0x46d   :  { %3111 = vpow2.f32 %v2066_v36  ;;  %2182 = vadd.xlane.f32.xlu1 %v3098_v15  ;;  %v2115_v1 = vpop.xlane.xlu1 %2114 }
 0x46e   :  { %3113 = vlog2.f32 %v2115_v1  ;;  %v2121_v37 = vpop.xlane.xlu0 %2120 }
 0x46f   :  { %3115 = vlog2.f32 %v2121_v37 }
 0x471   :  { %v3100_v60 = vpop.eup %3099  ;;  %v2123_v33 = vpop.xlane.xlu1 %2122 }
 0x472   :  { %v3102_v51 = vpop.eup %3101  ;;  %3117 = vlog2.f32 %v2123_v33  ;;  %2188 = vadd.xlane.f32.xlu0 %v3100_v60  ;;  %v2117_v46 = vpop.xlane.xlu0 %2116 }
 0x473   :  { %v3104_v45 = vpop.eup %3103  ;;  %v2237_v50 = vmul.f32 0.6931472, %v3102_v51  ;;  %3119 = vlog2.f32 %v2117_v46 }
 0x474   :  { %v3106_v48 = vpop.eup %3105 }
 0x475   :  { %v3108_v31 = vpop.eup %3107  ;;  %v2344_v61 = vsub.f32 %v3999_v63, %v2237_v50  ;;  %2190 = vadd.xlane.f32.xlu1 %v3106_v48  ;;  %v2119_v17 = vpop.xlane.xlu1 %2118 }
 0x476   :  { %v3110_v23 = vpop.eup %3109  ;;  %v2239_v9 = vmul.f32 0.6931472, %v3108_v31  ;;  %3121 = vlog2.f32 %v2119_v17  ;;  %2192 = vadd.xlane.f32.xlu0 %v3104_v45  ;;  %v2129_v8 = vpop.xlane.xlu0 %2128  ;;  %v4332_v17 = vld [vmem:[#allocation17_spill] sm:$0xff] }
 0x477   :  { %v3112_v47 = vpop.eup %3111  ;;  %2408 = vst [vmem:[#allocation2 + $0xa0] sm:$0xff] %v2344_v61  ;;  %v2241_v25 = vmul.f32 0.6931472, %v3110_v23  ;;  %3123 = vlog2.f32 %v2129_v8 }
 0x478   :  { %v3114_v4 = vpop.eup %3113  ;;  %v2345_v26 = vsub.f32 %v4005_v7, %v2239_v9 }
 0x479   :  { %v3116_v36 = vpop.eup %3115  ;;  %v2346_v29 = vsub.f32 %v4009_v12, %v2241_v25  ;;  %v2243_v6 = vmul.f32 0.6931472, %v3114_v4  ;;  %2194 = vadd.xlane.f32.xlu1 %v3112_v47  ;;  %v2131_v63 = vpop.xlane.xlu1 %2130 }
 0x47a   :  { %2409 = vst [vmem:[#allocation2 + $0xa8] sm:$0xff] %v2345_v26  ;;  %v2249_v15 = vmul.f32 0.6931472, %v3116_v36  ;;  %3125 = vlog2.f32 %v2131_v63  ;;  %v2125_v1 = vpop.xlane.xlu0 %2124 }
 0x47b   :  { %2410 = vst [vmem:[#allocation2 + $0xb0] sm:$0xff] %v2346_v29  ;;  %v2347_v37 = vsub.f32 %v4020_v27, %v2243_v6  ;;  %3127 = vlog2.f32 %v2125_v1 }
 0x47c   :  { %v3118_v60 = vpop.eup %3117  ;;  %v2350_v33 = vsub.f32 %v4029_v58, %v2249_v15 }
 0x47d   :  { %v3120_v51 = vpop.eup %3119  ;;  %2411 = vst [vmem:[#allocation2 + $0xb8] sm:$0xff] %v2347_v37  ;;  %v2251_v7 = vmul.f32 0.6931472, %v3118_v60  ;;  %v2127_v46 = vpop.xlane.xlu1 %2126 }
 0x47e   :  { %2414 = vst [vmem:[#allocation2 + $0xd0] sm:$0xff] %v2350_v33  ;;  %v2245_v12 = vmul.f32 0.6931472, %v3120_v51  ;;  %3129 = vlog2.f32 %v2127_v46 }
 0x47f   :  { %v2351_v45 = vsub.f32 %v4037_v39, %v2251_v7 }
 0x480   :  { %v3122_v50 = vpop.eup %3121  ;;  %v2348_v48 = vsub.f32 %v4045_v19, %v2245_v12 }
 0x481   :  { %v3124_v31 = vpop.eup %3123  ;;  %2415 = vst [vmem:[#allocation2 + $0xd8] sm:$0xff] %v2351_v45  ;;  %v2247_v61 = vmul.f32 0.6931472, %v3122_v50 }
 0x482   :  { %2412 = vst [vmem:[#allocation2 + $0xc0] sm:$0xff] %v2348_v48  ;;  %v2257_v27 = vmul.f32 0.6931472, %v3124_v31 }
 0x483   :  { %v2349_v23 = vsub.f32 %v4332_v17, %v2247_v61  ;;  %v2137_v58 = vpop.xlane.xlu0 %2136 }
 0x484   :  { %v3126_v9 = vpop.eup %3125  ;;  %v2354_v8 = vsub.f32 %v4061_v52, %v2257_v27  ;;  %3131 = vlog2.f32 %v2137_v58 }
 0x485   :  { %v3128_v47 = vpop.eup %3127  ;;  %2413 = vst [vmem:[#allocation2 + $0xc8] sm:$0xff] %v2349_v23  ;;  %v2259_v25 = vmul.f32 0.6931472, %v3126_v9  ;;  %v2139_v4 = vpop.xlane.xlu1 %2138 }
 0x486   :  { %2418 = vst [vmem:[#allocation2 + $0xf0] sm:$0xff] %v2354_v8  ;;  %v2253_v39 = vmul.f32 0.6931472, %v3128_v47  ;;  %3133 = vlog2.f32 %v2139_v4 }
 0x487   :  { %v2355_v19 = vsub.f32 %v4066_v24, %v2259_v25  ;;  %v2133_v26 = vpop.xlane.xlu0 %2132 }
 0x488   :  { %v3130_v36 = vpop.eup %3129  ;;  %v2352_v29 = vsub.f32 %v4070_v2, %v2253_v39  ;;  %3135 = vlog2.f32 %v2133_v26 }
 0x489   :  { %2419 = vst [vmem:[#allocation2 + $0xf8] sm:$0xff] %v2355_v19  ;;  %v2255_v6 = vmul.f32 0.6931472, %v3130_v36  ;;  %v2135_v63 = vpop.xlane.xlu1 %2134 }
 0x48a   :  { %2416 = vst [vmem:[#allocation2 + $0xe0] sm:$0xff] %v2352_v29  ;;  %3137 = vlog2.f32 %v2135_v63 }
 0x48b   :  { %v2353_v52 = vsub.f32 %v4074_v18, %v2255_v6 }
 0x48d   :  { %2417 = vst [vmem:[#allocation2 + $0xe8] sm:$0xff] %v2353_v52 }
 0x48e   :  { %v3132_v15 = vpop.eup %3131 }
 0x48f   :  { %v2265_v1 = vmul.f32 0.6931472, %v3132_v15 }
 0x490   :  { %v3134_v37 = vpop.eup %3133 }
 0x491   :  { %v2358_v60 = vsub.f32 %v4079_v10, %v2265_v1  ;;  %v2267_v33 = vmul.f32 0.6931472, %v3134_v37 }
 0x492   :  { %v3136_v24 = vpop.eup %3135 }
 0x493   :  { %2422 = vst [vmem:[#allocation2 + $0x110] sm:$0xff] %v2358_v60  ;;  %v2359_v51 = vsub.f32 %v4083_v32, %v2267_v33  ;;  %v2261_v2 = vmul.f32 0.6931472, %v3136_v24  ;;  %v2145_v7 = vpop.xlane.xlu0 %2144 }
 0x494   :  { %v3138_v46 = vpop.eup %3137  ;;  %3139 = vlog2.f32 %v2145_v7 }
 0x495   :  { %2423 = vst [vmem:[#allocation2 + $0x118] sm:$0xff] %v2359_v51  ;;  %v2356_v12 = vsub.f32 %v4087_v44, %v2261_v2  ;;  %v2263_v45 = vmul.f32 0.6931472, %v3138_v46  ;;  %v2147_v18 = vpop.xlane.xlu1 %2146 }
 0x496   :  { %3141 = vlog2.f32 %v2147_v18  ;;  %v4333_v18 = vld [vmem:[#allocation18_spill] sm:$0xff] }
 0x497   :  { %2420 = vst [vmem:[#allocation2 + $0x100] sm:$0xff] %v2356_v12  ;;  %v2357_v50 = vsub.f32 %v4091_v35, %v2263_v45  ;;  %v2141_v48 = vpop.xlane.xlu0 %2140 }
 0x498   :  { %3143 = vlog2.f32 %v2141_v48  ;;  %v4334_v48 = vld [vmem:[#allocation19_spill] sm:$0xff] }
 0x499   :  { %2421 = vst [vmem:[#allocation2 + $0x108] sm:$0xff] %v2357_v50  ;;  %v2143_v10 = vpop.xlane.xlu1 %2142 }
 0x49a   :  { %3145 = vlog2.f32 %v2143_v10 }
 0x49e   :  { %v3140_v31 = vpop.eup %3139 }
 0x49f   :  { %v2273_v32 = vmul.f32 0.6931472, %v3140_v31 }
 0x4a0   :  { %v3142_v61 = vpop.eup %3141 }
 0x4a1   :  { %v2362_v27 = vsub.f32 %v4095_v30, %v2273_v32  ;;  %v2275_v17 = vmul.f32 0.6931472, %v3142_v61 }
 0x4a2   :  { %v3144_v23 = vpop.eup %3143 }
 0x4a3   :  { %2426 = vst [vmem:[#allocation2 + $0x130] sm:$0xff] %v2362_v27  ;;  %v2363_v44 = vsub.f32 %v4099_v21, %v2275_v17  ;;  %v2269_v58 = vmul.f32 0.6931472, %v3144_v23  ;;  %v2153_v9 = vpop.xlane.xlu0 %2152 }
 0x4a4   :  { %v3146_v8 = vpop.eup %3145  ;;  %3147 = vlog2.f32 %v2153_v9 }
 0x4a5   :  { %2427 = vst [vmem:[#allocation2 + $0x138] sm:$0xff] %v2363_v44  ;;  %v2360_v35 = vsub.f32 %v4103_v53, %v2269_v58  ;;  %v2271_v47 = vmul.f32 0.6931472, %v3146_v8  ;;  %v2155_v25 = vpop.xlane.xlu1 %2154 }
 0x4a6   :  { %3149 = vlog2.f32 %v2155_v25 }
 0x4a7   :  { %2424 = vst [vmem:[#allocation2 + $0x120] sm:$0xff] %v2360_v35  ;;  %v2361_v4 = vsub.f32 %v4107_v42, %v2271_v47  ;;  %v2149_v39 = vpop.xlane.xlu0 %2148 }
 0x4a8   :  { %3151 = vlog2.f32 %v2149_v39 }
 0x4a9   :  { %2425 = vst [vmem:[#allocation2 + $0x128] sm:$0xff] %v2361_v4  ;;  %v2151_v30 = vpop.xlane.xlu1 %2150 }
 0x4aa   :  { %3153 = vlog2.f32 %v2151_v30 }
 0x4ae   :  { %v3148_v19 = vpop.eup %3147 }
 0x4af   :  { %v2281_v21 = vmul.f32 0.6931472, %v3148_v19 }
 0x4b0   :  { %v3150_v26 = vpop.eup %3149 }
 0x4b1   :  { %v2366_v36 = vsub.f32 %v4111_v34, %v2281_v21  ;;  %v2283_v29 = vmul.f32 0.6931472, %v3150_v26 }
 0x4b2   :  { %v3152_v6 = vpop.eup %3151 }
 0x4b3   :  { %2430 = vst [vmem:[#allocation2 + $0x150] sm:$0xff] %v2366_v36  ;;  %v2367_v53 = vsub.f32 %v4115_v38, %v2283_v29  ;;  %v2277_v63 = vmul.f32 0.6931472, %v3152_v6  ;;  %v2161_v52 = vpop.xlane.xlu0 %2160 }
 0x4b4   :  { %v3154_v15 = vpop.eup %3153  ;;  %3155 = vlog2.f32 %v2161_v52 }
 0x4b5   :  { %2431 = vst [vmem:[#allocation2 + $0x158] sm:$0xff] %v2367_v53  ;;  %v2364_v42 = vsub.f32 %v4119_v62, %v2277_v63  ;;  %v2279_v1 = vmul.f32 0.6931472, %v3154_v15  ;;  %v2163_v37 = vpop.xlane.xlu1 %2162 }
 0x4b6   :  { %3157 = vlog2.f32 %v2163_v37 }
 0x4b7   :  { %2428 = vst [vmem:[#allocation2 + $0x140] sm:$0xff] %v2364_v42  ;;  %v2365_v60 = vsub.f32 %v4123_v56, %v2279_v1  ;;  %v2157_v33 = vpop.xlane.xlu0 %2156 }
 0x4b8   :  { %3159 = vlog2.f32 %v2157_v33 }
 0x4b9   :  { %2429 = vst [vmem:[#allocation2 + $0x148] sm:$0xff] %v2365_v60  ;;  %v2159_v34 = vpop.xlane.xlu1 %2158 }
 0x4ba   :  { %3161 = vlog2.f32 %v2159_v34 }
 0x4be   :  { %v3156_v24 = vpop.eup %3155 }
 0x4bf   :  { %v2289_v38 = vmul.f32 0.6931472, %v3156_v24 }
 0x4c0   :  { %v3158_v51 = vpop.eup %3157 }
 0x4c1   :  { %v2370_v2 = vsub.f32 %v4127_v59, %v2289_v38  ;;  %v2291_v7 = vmul.f32 0.6931472, %v3158_v51 }
 0x4c2   :  { %v3160_v46 = vpop.eup %3159 }
 0x4c3   :  { %2434 = vst [vmem:[#allocation2 + $0x170] sm:$0xff] %v2370_v2  ;;  %v2371_v62 = vsub.f32 %v4131_v57, %v2291_v7  ;;  %v2285_v12 = vmul.f32 0.6931472, %v3160_v46 }
 0x4c4   :  { %v3162_v45 = vpop.eup %3161 }
 0x4c5   :  { %2435 = vst [vmem:[#allocation2 + $0x178] sm:$0xff] %v2371_v62  ;;  %v2368_v56 = vsub.f32 %v4333_v18, %v2285_v12  ;;  %v2287_v50 = vmul.f32 0.6931472, %v3162_v45 }
 0x4c7   :  { %2432 = vst [vmem:[#allocation2 + $0x160] sm:$0xff] %v2368_v56  ;;  %v2369_v10 = vsub.f32 %v4334_v48, %v2287_v50  ;;  %v2169_v31 = vpop.xlane.xlu0 %2168 }
 0x4c8   :  { %3163 = vlog2.f32 %v2169_v31 }
 0x4c9   :  { %2433 = vst [vmem:[#allocation2 + $0x168] sm:$0xff] %v2369_v10 }
 0x4ca   :  { %v2171_v32 = vpop.xlane.xlu1 %2170 }
 0x4cb   :  { %3165 = vlog2.f32 %v2171_v32 }
 0x4cf   :  { %v2165_v59 = vpop.xlane.xlu0 %2164 }
 0x4d0   :  { %3167 = vlog2.f32 %v2165_v59 }
 0x4d2   :  { %v3164_v61 = vpop.eup %3163  ;;  %v2167_v27 = vpop.xlane.xlu1 %2166 }
 0x4d3   :  { %v2297_v17 = vmul.f32 0.6931472, %v3164_v61  ;;  %3169 = vlog2.f32 %v2167_v27 }
 0x4d5   :  { %v3166_v57 = vpop.eup %3165  ;;  %v2374_v23 = vsub.f32 %v4143_v49, %v2297_v17 }
 0x4d6   :  { %v2299_v44 = vmul.f32 0.6931472, %v3166_v57 }
 0x4d7   :  { %2438 = vst [vmem:[#allocation2 + $0x190] sm:$0xff] %v2374_v23 }
 0x4d8   :  { %v2375_v58 = vsub.f32 %v4148_v14, %v2299_v44 }
 0x4da   :  { %v3168_v9 = vpop.eup %3167  ;;  %2439 = vst [vmem:[#allocation2 + $0x198] sm:$0xff] %v2375_v58 }
 0x4db   :  { %v2293_v8 = vmul.f32 0.6931472, %v3168_v9 }
 0x4dd   :  { %v3170_v35 = vpop.eup %3169  ;;  %v2372_v47 = vsub.f32 %v4155_v43, %v2293_v8 }
 0x4de   :  { %v2295_v25 = vmul.f32 0.6931472, %v3170_v35 }
 0x4df   :  { %2436 = vst [vmem:[#allocation2 + $0x180] sm:$0xff] %v2372_v47  ;;  %v2177_v4 = vpop.xlane.xlu0 %2176 }
 0x4e0   :  { %v2373_v39 = vsub.f32 %v4160_v28, %v2295_v25  ;;  %3171 = vlog2.f32 %v2177_v4 }
 0x4e2   :  { %2437 = vst [vmem:[#allocation2 + $0x188] sm:$0xff] %v2373_v39  ;;  %v2179_v30 = vpop.xlane.xlu1 %2178 }
 0x4e3   :  { %3173 = vlog2.f32 %v2179_v30 }
 0x4e7   :  { %v2173_v49 = vpop.xlane.xlu0 %2172 }
 0x4e8   :  { %3175 = vlog2.f32 %v2173_v49 }
 0x4ea   :  { %v3172_v19 = vpop.eup %3171  ;;  %v2175_v21 = vpop.xlane.xlu1 %2174 }
 0x4eb   :  { %v2305_v14 = vmul.f32 0.6931472, %v3172_v19  ;;  %3177 = vlog2.f32 %v2175_v21 }
 0x4ed   :  { %v3174_v26 = vpop.eup %3173  ;;  %v2378_v36 = vsub.f32 %v4167_v16, %v2305_v14 }
 0x4ee   :  { %v2307_v29 = vmul.f32 0.6931472, %v3174_v26 }
 0x4ef   :  { %2442 = vst [vmem:[#allocation2 + $0x1b0] sm:$0xff] %v2378_v36 }
 0x4f0   :  { %v2379_v43 = vsub.f32 %v4172_v40, %v2307_v29 }
 0x4f2   :  { %v3176_v6 = vpop.eup %3175  ;;  %2443 = vst [vmem:[#allocation2 + $0x1b8] sm:$0xff] %v2379_v43 }
 0x4f3   :  { %v2301_v28 = vmul.f32 0.6931472, %v3176_v6  ;;  %v2185_v53 = vpop.xlane.xlu0 %2184 }
 0x4f4   :  { %3179 = vlog2.f32 %v2185_v53 }
 0x4f5   :  { %v3178_v63 = vpop.eup %3177  ;;  %v2376_v52 = vsub.f32 %v4179_v11, %v2301_v28 }
 0x4f6   :  { %v2303_v15 = vmul.f32 0.6931472, %v3178_v63  ;;  %v2187_v42 = vpop.xlane.xlu1 %2186 }
 0x4f7   :  { %2440 = vst [vmem:[#allocation2 + $0x1a0] sm:$0xff] %v2376_v52  ;;  %3181 = vlog2.f32 %v2187_v42  ;;  %v2181_v1 = vpop.xlane.xlu0 %2180 }
 0x4f8   :  { %v2377_v37 = vsub.f32 %v4184_v5, %v2303_v15  ;;  %3183 = vlog2.f32 %v2181_v1 }
 0x4fa   :  { %2441 = vst [vmem:[#allocation2 + $0x1a8] sm:$0xff] %v2377_v37  ;;  %v2183_v16 = vpop.xlane.xlu1 %2182 }
 0x4fb   :  { %3185 = vlog2.f32 %v2183_v16 }
 0x4fe   :  { %v3180_v40 = vpop.eup %3179 }
 0x4ff   :  { %v2313_v60 = vmul.f32 0.6931472, %v3180_v40  ;;  %v2189_v33 = vpop.xlane.xlu0 %2188 }
 0x500   :  { %3187 = vlog2.f32 %v2189_v33 }
 0x501   :  { %v3182_v34 = vpop.eup %3181  ;;  %v2382_v24 = vsub.f32 %v4190_v55, %v2313_v60 }
 0x502   :  { %v3184_v38 = vpop.eup %3183  ;;  %v2315_v11 = vmul.f32 0.6931472, %v3182_v34  ;;  %v2191_v51 = vpop.xlane.xlu1 %2190 }
 0x503   :  { %2446 = vst [vmem:[#allocation2 + $0x1d0] sm:$0xff] %v2382_v24  ;;  %v2309_v2 = vmul.f32 0.6931472, %v3184_v38  ;;  %3189 = vlog2.f32 %v2191_v51  ;;  %v2193_v7 = vpop.xlane.xlu0 %2192 }
 0x504   :  { %v2383_v5 = vsub.f32 %v4195_v22, %v2315_v11  ;;  %3191 = vlog2.f32 %v2193_v7 }
 0x505   :  { %v3186_v46 = vpop.eup %3185  ;;  %v2380_v62 = vsub.f32 %v4198_v41, %v2309_v2 }
 0x506   :  { %2447 = vst [vmem:[#allocation2 + $0x1d8] sm:$0xff] %v2383_v5  ;;  %v2311_v12 = vmul.f32 0.6931472, %v3186_v46  ;;  %v2195_v45 = vpop.xlane.xlu1 %2194 }
 0x507   :  { %2444 = vst [vmem:[#allocation2 + $0x1c0] sm:$0xff] %v2380_v62  ;;  %3193 = vlog2.f32 %v2195_v45 }
 0x508   :  { %v2381_v55 = vsub.f32 %v4204_v20, %v2311_v12 }
 0x50a   :  { %v3188_v18 = vpop.eup %3187  ;;  %2445 = vst [vmem:[#allocation2 + $0x1c8] sm:$0xff] %v2381_v55 }
 0x50b   :  { %v2317_v56 = vmul.f32 0.6931472, %v3188_v18 }
 0x50d   :  { %v3190_v50 = vpop.eup %3189  ;;  %v2384_v48 = vsub.f32 %v4214_v3, %v2317_v56 }
 0x50e   :  { %v3192_v10 = vpop.eup %3191  ;;  %v2319_v31 = vmul.f32 0.6931472, %v3190_v50 }
 0x50f   :  { %2448 = vst [vmem:[#allocation2 + $0x1e0] sm:$0xff] %v2384_v48  ;;  %v2321_v22 = vmul.f32 0.6931472, %v3192_v10 }
 0x510   :  { %v2385_v32 = vsub.f32 %v4222_v13, %v2319_v31 }
 0x511   :  { %v3194_v41 = vpop.eup %3193  ;;  %v2386_v59 = vsub.f32 %v4210_v54, %v2321_v22 }
 0x512   :  { %2449 = vst [vmem:[#allocation2 + $0x1e8] sm:$0xff] %v2385_v32  ;;  %v2323_v61 = vmul.f32 0.6931472, %v3194_v41 }
 0x513   :  { %2450 = vst [vmem:[#allocation2 + $0x1f0] sm:$0xff] %v2386_v59 }
 0x514   :  { %v2387_v20 = vsub.f32 %v4218_v0, %v2323_v61 }
 0x516   :  { %2451 = vst [vmem:[#allocation2 + $0x1f8] sm:$0xff] %v2387_v20 }
 0x517   :  { %3206 = shalt.err (!%p3203_p4)
}
 0x518   :  { %s3207_s26 = scalar_lea.hbm %s4289_s7, 8192 }
 0x519   :  { %p3208_p5 = scmp.ne.s32.totalorder %s4289_s7, %s3207_s26  ;;  %p3211_p6 = scmp.lt.u32.totalorder %s3207_s26, %s4289_s7 }
 0x51b   :  { %p3213_p7 = pnand %p3211_p6, %p3208_p5 }
 0x51d   :  { %3216 = shalt.err (!%p3213_p7)
}
 0x51e   :  { %s3221_s8 = smov 128   ;;  %s3222_s9 = smov 8  }
 0x51f   :  { %2463 = dma.vmem_to_hbm [thread:$0]  %s2458_s22, 8192, %s4289_s7, [#allocation3], %s3221_s8, %s3221_s8, %s3222_s9  }
 0x520   :  { %3217 = dma.done.wait [#allocation3], 8192  }
 0x521   :  { %3218 = vsyncadd [#allocation3], 4294959104 }
 0x522   :  { %2467 = vsyncpa [#allocation3], 1 }

</bundles_post_ra>
